<compile_context>
chip_gen: v7x
topology: tpu7x:2x2x1
jax: 0.10.0
libtpu: 0.0.40
codegen_flags: <defaults>
</compile_context>

<pallas_src>
import functools

import jax
import jax.numpy as jnp
from jax import lax
from jax.experimental import pallas as pl
from jax.experimental.pallas import tpu as pltpu


# ---------------------------------------------------------------------------
# Pallas kernel: in-kernel padding + im2col scratch + single MXU matmul
#                + BN affine + PReLU epilogue (all fused)
# ---------------------------------------------------------------------------
def _conv_bn_prelu_kernel(x_ref, w_ref, scale_ref, bias_ref, alpha_ref, wpos_ref,
                          o_ref, col_ref, *, H, W, Cin):
    # x_ref:     (Cin, H*W)      channel-major image, original dtype (f32)
    # w_ref:     (Coutb, 9*Cin)  conv weights, compute dtype (bf16 by default)
    # scale_ref: (Coutb, 1) f32  BN scale  = gamma * rsqrt(var + eps)
    # bias_ref:  (Coutb, 1) f32  BN shift  = beta + scale * (conv_bias - mean)
    # alpha_ref: (Coutb, 1) f32  PReLU slope (per output channel)
    # wpos_ref:  (1, H*W) int32  pixel index modulo W (left/right border masks)
    # o_ref:     (Coutb, H*W)    output block, channel-major
    # col_ref:   (9*Cin, H*W)    im2col scratch, compute dtype
    HW = H * W
    x = x_ref[...]                                          # (Cin, HW)
    lane = lax.broadcasted_iota(jnp.int32, (1, HW), 1)      # flat pixel index r
    wpos = wpos_ref[...]                                    # r mod W

    # im2col:  col[(3*dh+dw)*Cin + ci, h*W + w] = x[ci, (h+dh-1)*W + (w+dw-1)]
    # when the source pixel lies inside the image, 0 otherwise (pad=1 halo).
    for dh in range(3):
        for dw in range(3):
            k = 3 * dh + dw
            off = (dh - 1) * W + (dw - 1)                   # flat source offset
            s = off % HW
            # shifted[:, r] = x[:, (r + off) mod HW]; the circular wrap only
            # lands on positions that the border mask zeroes out anyway.
            if s == 0:
                shifted = x
            else:
                shifted = jnp.concatenate([x[:, s:], x[:, :s]], axis=1)
            src = lane + off                                # flat source index
            wq = wpos + (dw - 1)                            # source column
            valid = (src >= 0) & (src < HW) & (wq >= 0) & (wq < W)
            tap = jnp.where(valid, shifted, jnp.zeros_like(shifted))
            col_ref[k * Cin:(k + 1) * Cin, :] = tap.astype(col_ref.dtype)

    # Single K = 9*Cin MXU matmul, f32 accumulation.
    acc = jnp.dot(w_ref[...], col_ref[...], preferred_element_type=jnp.float32)

    # f32 epilogue: BN affine (scale kept out of the bf16 weights) + PReLU.
    y = acc * scale_ref[...] + bias_ref[...]
    y = jnp.where(y >= 0.0, y, alpha_ref[...] * y)
    o_ref[...] = y.astype(o_ref.dtype)


# ---------------------------------------------------------------------------
# Wrapper: Conv2_5_6.forward  (NCHW in, NCHW out; only free reshapes in XLA)
# ---------------------------------------------------------------------------
def conv2_5_6_forward(x_nchw, params, *, eps=1e-5, compute_dtype=jnp.bfloat16):
    """Conv2d(3x3, s=1, p=1) + BatchNorm2d(eval) + PReLU.  NCHW in / NCHW out.

    MXU inputs use `compute_dtype` (bf16 by default on all TPU generations);
    accumulation and the BN/PReLU epilogue are always float32.
    """
    w = params["w"]                      # (Cout, Cin, 3, 3)  PyTorch OIHW
    conv_b = params["b"]                 # (Cout,)
    gamma, beta = params["gamma"], params["beta"]
    mean, var = params["mean"], params["var"]
    alpha = params["alpha"]              # (1,) shared slope or (Cout,) per-channel

    B, Cin, H, W = x_nchw.shape
    Cout = w.shape[0]
    HW = H * W

    # Activation path: only free reshapes (no pad, no transpose, no cast).
    x_flat = x_nchw.reshape(B, Cin, HW)

    # Weights: OIHW -> (Cout, kh, kw, Cin) -> (Cout, 9*Cin); K order matches the
    # im2col rows k = 3*dh + dw built inside the kernel.
    w2 = jnp.transpose(w, (0, 2, 3, 1)).reshape(Cout, 9 * Cin).astype(compute_dtype)

    scale = (gamma * lax.rsqrt(var + eps)).astype(jnp.float32)
    bias = (beta + scale * (conv_b - mean)).astype(jnp.float32)
    alpha_vec = jnp.broadcast_to(jnp.reshape(alpha, (-1,)), (Cout,)).astype(jnp.float32)
    scale = scale.reshape(Cout, 1)
    bias = bias.reshape(Cout, 1)
    alpha_vec = alpha_vec.reshape(Cout, 1)

    # Column index modulo W (used for the left/right border masks in-kernel;
    # avoids an in-kernel vector integer mod).
    wpos = (jnp.arange(HW, dtype=jnp.int32) % W).reshape(1, HW)

    # >= 2 parallel grid steps even when B == 1 (keeps both v7x TensorCores
    # busy at inference); with B >= 2 the batch axis already provides that.
    n_c = 1 if B >= 2 else 2
    if Cout % n_c != 0 or (Cout // n_c) % 8 != 0:
        n_c = 1
    Coutb = Cout // n_c

    kernel = functools.partial(_conv_bn_prelu_kernel, H=H, W=W, Cin=Cin)

    flops = 2 * B * HW * 9 * Cin * Cout
    bytes_accessed = int(x_flat.size * x_flat.dtype.itemsize
                         + w2.size * w2.dtype.itemsize
                         + B * Cout * HW * jnp.dtype(x_nchw.dtype).itemsize)

    out = pl.pallas_call(
        kernel,
        out_shape=jax.ShapeDtypeStruct((B, Cout, HW), x_nchw.dtype),
        grid=(B, n_c),
        in_specs=[
            # Whole image per step; block index constant across the Cout axis,
            # so its DMA is skipped on revisits.
            pl.BlockSpec((None, Cin, HW), lambda b, c: (b, 0, 0)),
            pl.BlockSpec((Coutb, 9 * Cin), lambda b, c: (c, 0)),   # weights
            pl.BlockSpec((Coutb, 1), lambda b, c: (c, 0)),         # BN scale
            pl.BlockSpec((Coutb, 1), lambda b, c: (c, 0)),         # BN bias
            pl.BlockSpec((Coutb, 1), lambda b, c: (c, 0)),         # PReLU slope
            pl.BlockSpec((1, HW), lambda b, c: (0, 0)),            # wpos
        ],
        out_specs=pl.BlockSpec((None, Coutb, HW), lambda b, c: (b, c, 0)),
        scratch_shapes=[pltpu.VMEM((9 * Cin, HW), compute_dtype)],
        compiler_params=pltpu.CompilerParams(
            dimension_semantics=("parallel", "parallel"),
            vmem_limit_bytes=48 * 1024 * 1024,
        ),
        cost_estimate=pl.CostEstimate(flops=flops, transcendentals=0,
                                      bytes_accessed=bytes_accessed),
    )(x_flat, w2, scale, bias, alpha_vec, wpos)

    return out.reshape(B, Cout, H, W)


# ---------------------------------------------------------------------------
# Deterministic parameter init (synthetic; shapes follow the nn.Module)
# ---------------------------------------------------------------------------
def init_params(key, cin=64, cout=128):
    k = jax.random.split(key, 6)
    return {
        "w": 0.1 * jax.random.normal(k[0], (cout, cin, 3, 3), jnp.float32),
        "b": 0.05 * jax.random.normal(k[1], (cout,), jnp.float32),
        "gamma": 1.0 + 0.1 * jax.random.normal(k[2], (cout,), jnp.float32),
        "beta": 0.05 * jax.random.normal(k[3], (cout,), jnp.float32),
        "mean": 0.02 * jax.random.normal(k[4], (cout,), jnp.float32),
        "var": 0.5 + jnp.abs(jax.random.normal(k[5], (cout,), jnp.float32)),
        "alpha": jnp.full((1,), 0.25, jnp.float32),   # nn.PReLU() default slope
    }


# ---------------------------------------------------------------------------
# Pure-JAX reference (correctness check of the Pallas path)
# ---------------------------------------------------------------------------
def _ref_forward(x_nchw, params, eps=1e-5):
    z = lax.conv_general_dilated(
        x_nchw, params["w"], window_strides=(1, 1),
        padding=((1, 1), (1, 1)),
        dimension_numbers=("NCHW", "OIHW", "NCHW"),
    ) + params["b"].reshape(1, -1, 1, 1)
    g = params["gamma"].reshape(1, -1, 1, 1)
    bt = params["beta"].reshape(1, -1, 1, 1)
    mu = params["mean"].reshape(1, -1, 1, 1)
    vr = params["var"].reshape(1, -1, 1, 1)
    z = g * (z - mu) * lax.rsqrt(vr + eps) + bt
    a = jnp.reshape(params["alpha"], (1, -1, 1, 1))
    return jnp.where(z >= 0.0, z, a * z)


# ---------------------------------------------------------------------------
if __name__ == "__main__":
    key = jax.random.PRNGKey(0)
    k_x, k_p = jax.random.split(key)

    B, CIN, H, W = 2, 64, 16, 16        # module defaults: in_channels=64
    COUT = 128                          # module defaults: out_channels=128

    x = jax.random.normal(k_x, (B, CIN, H, W), jnp.float32)   # NCHW input
    params = init_params(k_p, CIN, COUT)

    ref = _ref_forward(x, params)

    # Default path: bf16 MXU inputs, f32 accumulate + f32 epilogue.
    out = jax.jit(conv2_5_6_forward)(x, params)
    out = jax.block_until_ready(out)
    assert out.shape == ref.shape and out.dtype == ref.dtype
    rel = float(jnp.max(jnp.abs(out - ref)) / (jnp.max(jnp.abs(ref)) + 1e-6))
    assert rel < 5e-2, f"bf16 mismatch vs reference (relative): {rel}"

    # f32-matmul path: tight check of the im2col / padding / indexing logic.
    out_f32 = jax.jit(
        functools.partial(conv2_5_6_forward, compute_dtype=jnp.float32)
    )(x, params)
    out_f32 = jax.block_until_ready(out_f32)
    err = float(jnp.max(jnp.abs(out_f32 - ref)))
    assert err < 5e-4, f"f32 mismatch vs reference: {err}"

    # B == 1 exercises the Cout-split grid (>= 2 parallel steps for v7x).
    out_b1 = jax.jit(conv2_5_6_forward)(x[:1], params)
    out_b1 = jax.block_until_ready(out_b1)
    rel1 = float(jnp.max(jnp.abs(out_b1 - ref[:1])) /
                 (jnp.max(jnp.abs(ref[:1])) + 1e-6))
    assert rel1 < 5e-2, f"B=1 mismatch vs reference (relative): {rel1}"

    print("KERNEL_OK")
</pallas_src>

<mosaic_0001>
module attributes {stable_mosaic.version = 11 : i64} {
  func.func @_conv_bn_prelu_kernel(%arg0: i32, %arg1: i32, %arg2: memref<1x64x256xf32, #tpu.memory_space<vmem>>, %arg3: memref<128x576xbf16, #tpu.memory_space<vmem>>, %arg4: memref<128x1xf32, #tpu.memory_space<vmem>>, %arg5: memref<128x1xf32, #tpu.memory_space<vmem>>, %arg6: memref<128x1xf32, #tpu.memory_space<vmem>>, %arg7: memref<1x256xi32, #tpu.memory_space<vmem>>, %arg8: memref<1x128x256xf32, #tpu.memory_space<vmem>>, %arg9: memref<576x256xbf16, #tpu.memory_space<vmem>>) attributes {dimension_semantics = [#tpu.dimension_semantics<parallel>, #tpu.dimension_semantics<parallel>], iteration_bounds = array<i64: 2, 1>, scalar_prefetch = 0 : i64, scratch_operands = 1 : i64, tpu.core_type = #tpu.core_type<tc>, window_params = [{transform_indices = @transform_0, window_bounds = array<i64: 1, 64, 256>}, {transform_indices = @transform_1, window_bounds = array<i64: 128, 576>}, {transform_indices = @transform_2, window_bounds = array<i64: 128, 1>}, {transform_indices = @transform_3, window_bounds = array<i64: 128, 1>}, {transform_indices = @transform_4, window_bounds = array<i64: 128, 1>}, {pipeline_mode = #tpu.pipeline_mode<synchronous>, transform_indices = @transform_5, window_bounds = array<i64: 1, 256>}, {transform_indices = @transform_6, window_bounds = array<i64: 1, 128, 256>}]} {
    %c0 = arith.constant 0 : index
    %c0_0 = arith.constant 0 : index
    %c0_1 = arith.constant 0 : index
    %0 = vector.load %arg2[%c0, %c0_0, %c0_1] : memref<1x64x256xf32, #tpu.memory_space<vmem>>, vector<1x64x256xf32>
    %1 = vector.shape_cast %0 : vector<1x64x256xf32> to vector<64x256xf32>
    %2 = tpu.iota {dimensions = array<i32: 1>} : vector<1x256xi32>
    %c0_2 = arith.constant 0 : index
    %c0_3 = arith.constant 0 : index
    %3 = vector.load %arg7[%c0_2, %c0_3] : memref<1x256xi32, #tpu.memory_space<vmem>>, vector<1x256xi32>
    %4 = vector.extract_strided_slice %1 {offsets = [0, 239], sizes = [64, 17], strides = [1, 1]} : vector<64x256xf32> to vector<64x17xf32>
    %5 = vector.extract_strided_slice %1 {offsets = [0, 0], sizes = [64, 239], strides = [1, 1]} : vector<64x256xf32> to vector<64x239xf32>
    %6 = tpu.concatenate %4, %5 in 1 : vector<64x17xf32>, vector<64x239xf32> -> vector<64x256xf32>
    %c-17_i32 = arith.constant -17 : i32
    %7 = vector.broadcast %c-17_i32 : i32 to vector<1x256xi32>
    %8 = arith.addi %2, %7 : vector<1x256xi32>
    %c-1_i32 = arith.constant -1 : i32
    %9 = vector.broadcast %c-1_i32 : i32 to vector<1x256xi32>
    %10 = arith.addi %3, %9 : vector<1x256xi32>
    %c0_i32 = arith.constant 0 : i32
    %11 = vector.broadcast %c0_i32 : i32 to vector<1x256xi32>
    %12 = arith.cmpi sge, %8, %11 : vector<1x256xi32>
    %c256_i32 = arith.constant 256 : i32
    %13 = vector.broadcast %c256_i32 : i32 to vector<1x256xi32>
    %14 = arith.cmpi slt, %8, %13 : vector<1x256xi32>
    %15 = arith.andi %12, %14 : vector<1x256xi1>
    %c0_i32_4 = arith.constant 0 : i32
    %16 = vector.broadcast %c0_i32_4 : i32 to vector<1x256xi32>
    %17 = arith.cmpi sge, %10, %16 : vector<1x256xi32>
    %18 = arith.andi %15, %17 : vector<1x256xi1>
    %c16_i32 = arith.constant 16 : i32
    %19 = vector.broadcast %c16_i32 : i32 to vector<1x256xi32>
    %20 = arith.cmpi slt, %10, %19 : vector<1x256xi32>
    %21 = arith.andi %18, %20 : vector<1x256xi1>
    %cst = arith.constant 0.000000e+00 : f32
    %22 = vector.broadcast %cst : f32 to vector<64x256xf32>
    %23 = vector.shape_cast %21 : vector<1x256xi1> to vector<1x256xi1>
    %24 = vector.broadcast %23 : vector<1x256xi1> to vector<64x256xi1>
    %25 = arith.select %24, %6, %22 : vector<64x256xi1>, vector<64x256xf32>
    %26 = arith.truncf %25 : vector<64x256xf32> to vector<64x256xbf16>
    %c0_5 = arith.constant 0 : index
    %c0_6 = arith.constant 0 : index
    %27 = vector.load %arg9[%c0_5, %c0_6] : memref<576x256xbf16, #tpu.memory_space<vmem>>, vector<64x256xbf16>
    tpu.vector_store %arg9[%c0_5, %c0_6], %26 {strides = array<i32>} : memref<576x256xbf16, #tpu.memory_space<vmem>>, vector<64x256xbf16>,
    %28 = vector.extract_strided_slice %1 {offsets = [0, 240], sizes = [64, 16], strides = [1, 1]} : vector<64x256xf32> to vector<64x16xf32>
    %29 = vector.extract_strided_slice %1 {offsets = [0, 0], sizes = [64, 240], strides = [1, 1]} : vector<64x256xf32> to vector<64x240xf32>
    %30 = tpu.concatenate %28, %29 in 1 : vector<64x16xf32>, vector<64x240xf32> -> vector<64x256xf32>
    %c-16_i32 = arith.constant -16 : i32
    %31 = vector.broadcast %c-16_i32 : i32 to vector<1x256xi32>
    %32 = arith.addi %2, %31 : vector<1x256xi32>
    %c0_i32_7 = arith.constant 0 : i32
    %33 = vector.broadcast %c0_i32_7 : i32 to vector<1x256xi32>
    %34 = arith.addi %3, %33 : vector<1x256xi32>
    %c0_i32_8 = arith.constant 0 : i32
    %35 = vector.broadcast %c0_i32_8 : i32 to vector<1x256xi32>
    %36 = arith.cmpi sge, %32, %35 : vector<1x256xi32>
    %c256_i32_9 = arith.constant 256 : i32
    %37 = vector.broadcast %c256_i32_9 : i32 to vector<1x256xi32>
    %38 = arith.cmpi slt, %32, %37 : vector<1x256xi32>
    %39 = arith.andi %36, %38 : vector<1x256xi1>
    %c0_i32_10 = arith.constant 0 : i32
    %40 = vector.broadcast %c0_i32_10 : i32 to vector<1x256xi32>
    %41 = arith.cmpi sge, %34, %40 : vector<1x256xi32>
    %42 = arith.andi %39, %41 : vector<1x256xi1>
    %c16_i32_11 = arith.constant 16 : i32
    %43 = vector.broadcast %c16_i32_11 : i32 to vector<1x256xi32>
    %44 = arith.cmpi slt, %34, %43 : vector<1x256xi32>
    %45 = arith.andi %42, %44 : vector<1x256xi1>
    %cst_12 = arith.constant 0.000000e+00 : f32
    %46 = vector.broadcast %cst_12 : f32 to vector<64x256xf32>
    %47 = vector.shape_cast %45 : vector<1x256xi1> to vector<1x256xi1>
    %48 = vector.broadcast %47 : vector<1x256xi1> to vector<64x256xi1>
    %49 = arith.select %48, %30, %46 : vector<64x256xi1>, vector<64x256xf32>
    %50 = arith.truncf %49 : vector<64x256xf32> to vector<64x256xbf16>
    %c64 = arith.constant 64 : index
    %c0_13 = arith.constant 0 : index
    %51 = vector.load %arg9[%c64, %c0_13] : memref<576x256xbf16, #tpu.memory_space<vmem>>, vector<64x256xbf16>
    tpu.vector_store %arg9[%c64, %c0_13], %50 {strides = array<i32>} : memref<576x256xbf16, #tpu.memory_space<vmem>>, vector<64x256xbf16>,
    %52 = vector.extract_strided_slice %1 {offsets = [0, 241], sizes = [64, 15], strides = [1, 1]} : vector<64x256xf32> to vector<64x15xf32>
    %53 = vector.extract_strided_slice %1 {offsets = [0, 0], sizes = [64, 241], strides = [1, 1]} : vector<64x256xf32> to vector<64x241xf32>
    %54 = tpu.concatenate %52, %53 in 1 : vector<64x15xf32>, vector<64x241xf32> -> vector<64x256xf32>
    %c-15_i32 = arith.constant -15 : i32
    %55 = vector.broadcast %c-15_i32 : i32 to vector<1x256xi32>
    %56 = arith.addi %2, %55 : vector<1x256xi32>
    %c1_i32 = arith.constant 1 : i32
    %57 = vector.broadcast %c1_i32 : i32 to vector<1x256xi32>
    %58 = arith.addi %3, %57 : vector<1x256xi32>
    %c0_i32_14 = arith.constant 0 : i32
    %59 = vector.broadcast %c0_i32_14 : i32 to vector<1x256xi32>
    %60 = arith.cmpi sge, %56, %59 : vector<1x256xi32>
    %c256_i32_15 = arith.constant 256 : i32
    %61 = vector.broadcast %c256_i32_15 : i32 to vector<1x256xi32>
    %62 = arith.cmpi slt, %56, %61 : vector<1x256xi32>
    %63 = arith.andi %60, %62 : vector<1x256xi1>
    %c0_i32_16 = arith.constant 0 : i32
    %64 = vector.broadcast %c0_i32_16 : i32 to vector<1x256xi32>
    %65 = arith.cmpi sge, %58, %64 : vector<1x256xi32>
    %66 = arith.andi %63, %65 : vector<1x256xi1>
    %c16_i32_17 = arith.constant 16 : i32
    %67 = vector.broadcast %c16_i32_17 : i32 to vector<1x256xi32>
    %68 = arith.cmpi slt, %58, %67 : vector<1x256xi32>
    %69 = arith.andi %66, %68 : vector<1x256xi1>
    %cst_18 = arith.constant 0.000000e+00 : f32
    %70 = vector.broadcast %cst_18 : f32 to vector<64x256xf32>
    %71 = vector.shape_cast %69 : vector<1x256xi1> to vector<1x256xi1>
    %72 = vector.broadcast %71 : vector<1x256xi1> to vector<64x256xi1>
    %73 = arith.select %72, %54, %70 : vector<64x256xi1>, vector<64x256xf32>
    %74 = arith.truncf %73 : vector<64x256xf32> to vector<64x256xbf16>
    %c128 = arith.constant 128 : index
    %c0_19 = arith.constant 0 : index
    %75 = vector.load %arg9[%c128, %c0_19] : memref<576x256xbf16, #tpu.memory_space<vmem>>, vector<64x256xbf16>
    tpu.vector_store %arg9[%c128, %c0_19], %74 {strides = array<i32>} : memref<576x256xbf16, #tpu.memory_space<vmem>>, vector<64x256xbf16>,
    %76 = vector.extract_strided_slice %1 {offsets = [0, 255], sizes = [64, 1], strides = [1, 1]} : vector<64x256xf32> to vector<64x1xf32>
    %77 = vector.extract_strided_slice %1 {offsets = [0, 0], sizes = [64, 255], strides = [1, 1]} : vector<64x256xf32> to vector<64x255xf32>
    %78 = tpu.concatenate %76, %77 in 1 : vector<64x1xf32>, vector<64x255xf32> -> vector<64x256xf32>
    %c-1_i32_20 = arith.constant -1 : i32
    %79 = vector.broadcast %c-1_i32_20 : i32 to vector<1x256xi32>
    %80 = arith.addi %2, %79 : vector<1x256xi32>
    %c-1_i32_21 = arith.constant -1 : i32
    %81 = vector.broadcast %c-1_i32_21 : i32 to vector<1x256xi32>
    %82 = arith.addi %3, %81 : vector<1x256xi32>
    %c0_i32_22 = arith.constant 0 : i32
    %83 = vector.broadcast %c0_i32_22 : i32 to vector<1x256xi32>
    %84 = arith.cmpi sge, %80, %83 : vector<1x256xi32>
    %c256_i32_23 = arith.constant 256 : i32
    %85 = vector.broadcast %c256_i32_23 : i32 to vector<1x256xi32>
    %86 = arith.cmpi slt, %80, %85 : vector<1x256xi32>
    %87 = arith.andi %84, %86 : vector<1x256xi1>
    %c0_i32_24 = arith.constant 0 : i32
    %88 = vector.broadcast %c0_i32_24 : i32 to vector<1x256xi32>
    %89 = arith.cmpi sge, %82, %88 : vector<1x256xi32>
    %90 = arith.andi %87, %89 : vector<1x256xi1>
    %c16_i32_25 = arith.constant 16 : i32
    %91 = vector.broadcast %c16_i32_25 : i32 to vector<1x256xi32>
    %92 = arith.cmpi slt, %82, %91 : vector<1x256xi32>
    %93 = arith.andi %90, %92 : vector<1x256xi1>
    %cst_26 = arith.constant 0.000000e+00 : f32
    %94 = vector.broadcast %cst_26 : f32 to vector<64x256xf32>
    %95 = vector.shape_cast %93 : vector<1x256xi1> to vector<1x256xi1>
    %96 = vector.broadcast %95 : vector<1x256xi1> to vector<64x256xi1>
    %97 = arith.select %96, %78, %94 : vector<64x256xi1>, vector<64x256xf32>
    %98 = arith.truncf %97 : vector<64x256xf32> to vector<64x256xbf16>
    %c192 = arith.constant 192 : index
    %c0_27 = arith.constant 0 : index
    %99 = vector.load %arg9[%c192, %c0_27] : memref<576x256xbf16, #tpu.memory_space<vmem>>, vector<64x256xbf16>
    tpu.vector_store %arg9[%c192, %c0_27], %98 {strides = array<i32>} : memref<576x256xbf16, #tpu.memory_space<vmem>>, vector<64x256xbf16>,
    %c0_i32_28 = arith.constant 0 : i32
    %100 = vector.broadcast %c0_i32_28 : i32 to vector<1x256xi32>
    %101 = arith.addi %2, %100 : vector<1x256xi32>
    %c0_i32_29 = arith.constant 0 : i32
    %102 = vector.broadcast %c0_i32_29 : i32 to vector<1x256xi32>
    %103 = arith.addi %3, %102 : vector<1x256xi32>
    %c0_i32_30 = arith.constant 0 : i32
    %104 = vector.broadcast %c0_i32_30 : i32 to vector<1x256xi32>
    %105 = arith.cmpi sge, %101, %104 : vector<1x256xi32>
    %c256_i32_31 = arith.constant 256 : i32
    %106 = vector.broadcast %c256_i32_31 : i32 to vector<1x256xi32>
    %107 = arith.cmpi slt, %101, %106 : vector<1x256xi32>
    %108 = arith.andi %105, %107 : vector<1x256xi1>
    %c0_i32_32 = arith.constant 0 : i32
    %109 = vector.broadcast %c0_i32_32 : i32 to vector<1x256xi32>
    %110 = arith.cmpi sge, %103, %109 : vector<1x256xi32>
    %111 = arith.andi %108, %110 : vector<1x256xi1>
    %c16_i32_33 = arith.constant 16 : i32
    %112 = vector.broadcast %c16_i32_33 : i32 to vector<1x256xi32>
    %113 = arith.cmpi slt, %103, %112 : vector<1x256xi32>
    %114 = arith.andi %111, %113 : vector<1x256xi1>
    %cst_34 = arith.constant 0.000000e+00 : f32
    %115 = vector.broadcast %cst_34 : f32 to vector<64x256xf32>
    %116 = vector.shape_cast %114 : vector<1x256xi1> to vector<1x256xi1>
    %117 = vector.broadcast %116 : vector<1x256xi1> to vector<64x256xi1>
    %118 = arith.select %117, %1, %115 : vector<64x256xi1>, vector<64x256xf32>
    %119 = arith.truncf %118 : vector<64x256xf32> to vector<64x256xbf16>
    %c256 = arith.constant 256 : index
    %c0_35 = arith.constant 0 : index
    %120 = vector.load %arg9[%c256, %c0_35] : memref<576x256xbf16, #tpu.memory_space<vmem>>, vector<64x256xbf16>
    tpu.vector_store %arg9[%c256, %c0_35], %119 {strides = array<i32>} : memref<576x256xbf16, #tpu.memory_space<vmem>>, vector<64x256xbf16>,
    %121 = vector.extract_strided_slice %1 {offsets = [0, 1], sizes = [64, 255], strides = [1, 1]} : vector<64x256xf32> to vector<64x255xf32>
    %122 = vector.extract_strided_slice %1 {offsets = [0, 0], sizes = [64, 1], strides = [1, 1]} : vector<64x256xf32> to vector<64x1xf32>
    %123 = tpu.concatenate %121, %122 in 1 : vector<64x255xf32>, vector<64x1xf32> -> vector<64x256xf32>
    %c1_i32_36 = arith.constant 1 : i32
    %124 = vector.broadcast %c1_i32_36 : i32 to vector<1x256xi32>
    %125 = arith.addi %2, %124 : vector<1x256xi32>
    %c1_i32_37 = arith.constant 1 : i32
    %126 = vector.broadcast %c1_i32_37 : i32 to vector<1x256xi32>
    %127 = arith.addi %3, %126 : vector<1x256xi32>
    %c0_i32_38 = arith.constant 0 : i32
    %128 = vector.broadcast %c0_i32_38 : i32 to vector<1x256xi32>
    %129 = arith.cmpi sge, %125, %128 : vector<1x256xi32>
    %c256_i32_39 = arith.constant 256 : i32
    %130 = vector.broadcast %c256_i32_39 : i32 to vector<1x256xi32>
    %131 = arith.cmpi slt, %125, %130 : vector<1x256xi32>
    %132 = arith.andi %129, %131 : vector<1x256xi1>
    %c0_i32_40 = arith.constant 0 : i32
    %133 = vector.broadcast %c0_i32_40 : i32 to vector<1x256xi32>
    %134 = arith.cmpi sge, %127, %133 : vector<1x256xi32>
    %135 = arith.andi %132, %134 : vector<1x256xi1>
    %c16_i32_41 = arith.constant 16 : i32
    %136 = vector.broadcast %c16_i32_41 : i32 to vector<1x256xi32>
    %137 = arith.cmpi slt, %127, %136 : vector<1x256xi32>
    %138 = arith.andi %135, %137 : vector<1x256xi1>
    %cst_42 = arith.constant 0.000000e+00 : f32
    %139 = vector.broadcast %cst_42 : f32 to vector<64x256xf32>
    %140 = vector.shape_cast %138 : vector<1x256xi1> to vector<1x256xi1>
    %141 = vector.broadcast %140 : vector<1x256xi1> to vector<64x256xi1>
    %142 = arith.select %141, %123, %139 : vector<64x256xi1>, vector<64x256xf32>
    %143 = arith.truncf %142 : vector<64x256xf32> to vector<64x256xbf16>
    %c320 = arith.constant 320 : index
    %c0_43 = arith.constant 0 : index
    %144 = vector.load %arg9[%c320, %c0_43] : memref<576x256xbf16, #tpu.memory_space<vmem>>, vector<64x256xbf16>
    tpu.vector_store %arg9[%c320, %c0_43], %143 {strides = array<i32>} : memref<576x256xbf16, #tpu.memory_space<vmem>>, vector<64x256xbf16>,
    %145 = vector.extract_strided_slice %1 {offsets = [0, 15], sizes = [64, 241], strides = [1, 1]} : vector<64x256xf32> to vector<64x241xf32>
    %146 = vector.extract_strided_slice %1 {offsets = [0, 0], sizes = [64, 15], strides = [1, 1]} : vector<64x256xf32> to vector<64x15xf32>
    %147 = tpu.concatenate %145, %146 in 1 : vector<64x241xf32>, vector<64x15xf32> -> vector<64x256xf32>
    %c15_i32 = arith.constant 15 : i32
    %148 = vector.broadcast %c15_i32 : i32 to vector<1x256xi32>
    %149 = arith.addi %2, %148 : vector<1x256xi32>
    %c-1_i32_44 = arith.constant -1 : i32
    %150 = vector.broadcast %c-1_i32_44 : i32 to vector<1x256xi32>
    %151 = arith.addi %3, %150 : vector<1x256xi32>
    %c0_i32_45 = arith.constant 0 : i32
    %152 = vector.broadcast %c0_i32_45 : i32 to vector<1x256xi32>
    %153 = arith.cmpi sge, %149, %152 : vector<1x256xi32>
    %c256_i32_46 = arith.constant 256 : i32
    %154 = vector.broadcast %c256_i32_46 : i32 to vector<1x256xi32>
    %155 = arith.cmpi slt, %149, %154 : vector<1x256xi32>
    %156 = arith.andi %153, %155 : vector<1x256xi1>
    %c0_i32_47 = arith.constant 0 : i32
    %157 = vector.broadcast %c0_i32_47 : i32 to vector<1x256xi32>
    %158 = arith.cmpi sge, %151, %157 : vector<1x256xi32>
    %159 = arith.andi %156, %158 : vector<1x256xi1>
    %c16_i32_48 = arith.constant 16 : i32
    %160 = vector.broadcast %c16_i32_48 : i32 to vector<1x256xi32>
    %161 = arith.cmpi slt, %151, %160 : vector<1x256xi32>
    %162 = arith.andi %159, %161 : vector<1x256xi1>
    %cst_49 = arith.constant 0.000000e+00 : f32
    %163 = vector.broadcast %cst_49 : f32 to vector<64x256xf32>
    %164 = vector.shape_cast %162 : vector<1x256xi1> to vector<1x256xi1>
    %165 = vector.broadcast %164 : vector<1x256xi1> to vector<64x256xi1>
    %166 = arith.select %165, %147, %163 : vector<64x256xi1>, vector<64x256xf32>
    %167 = arith.truncf %166 : vector<64x256xf32> to vector<64x256xbf16>
    %c384 = arith.constant 384 : index
    %c0_50 = arith.constant 0 : index
    %168 = vector.load %arg9[%c384, %c0_50] : memref<576x256xbf16, #tpu.memory_space<vmem>>, vector<64x256xbf16>
    tpu.vector_store %arg9[%c384, %c0_50], %167 {strides = array<i32>} : memref<576x256xbf16, #tpu.memory_space<vmem>>, vector<64x256xbf16>,
    %169 = vector.extract_strided_slice %1 {offsets = [0, 16], sizes = [64, 240], strides = [1, 1]} : vector<64x256xf32> to vector<64x240xf32>
    %170 = vector.extract_strided_slice %1 {offsets = [0, 0], sizes = [64, 16], strides = [1, 1]} : vector<64x256xf32> to vector<64x16xf32>
    %171 = tpu.concatenate %169, %170 in 1 : vector<64x240xf32>, vector<64x16xf32> -> vector<64x256xf32>
    %c16_i32_51 = arith.constant 16 : i32
    %172 = vector.broadcast %c16_i32_51 : i32 to vector<1x256xi32>
    %173 = arith.addi %2, %172 : vector<1x256xi32>
    %c0_i32_52 = arith.constant 0 : i32
    %174 = vector.broadcast %c0_i32_52 : i32 to vector<1x256xi32>
    %175 = arith.addi %3, %174 : vector<1x256xi32>
    %c0_i32_53 = arith.constant 0 : i32
    %176 = vector.broadcast %c0_i32_53 : i32 to vector<1x256xi32>
    %177 = arith.cmpi sge, %173, %176 : vector<1x256xi32>
    %c256_i32_54 = arith.constant 256 : i32
    %178 = vector.broadcast %c256_i32_54 : i32 to vector<1x256xi32>
    %179 = arith.cmpi slt, %173, %178 : vector<1x256xi32>
    %180 = arith.andi %177, %179 : vector<1x256xi1>
    %c0_i32_55 = arith.constant 0 : i32
    %181 = vector.broadcast %c0_i32_55 : i32 to vector<1x256xi32>
    %182 = arith.cmpi sge, %175, %181 : vector<1x256xi32>
    %183 = arith.andi %180, %182 : vector<1x256xi1>
    %c16_i32_56 = arith.constant 16 : i32
    %184 = vector.broadcast %c16_i32_56 : i32 to vector<1x256xi32>
    %185 = arith.cmpi slt, %175, %184 : vector<1x256xi32>
    %186 = arith.andi %183, %185 : vector<1x256xi1>
    %cst_57 = arith.constant 0.000000e+00 : f32
    %187 = vector.broadcast %cst_57 : f32 to vector<64x256xf32>
    %188 = vector.shape_cast %186 : vector<1x256xi1> to vector<1x256xi1>
    %189 = vector.broadcast %188 : vector<1x256xi1> to vector<64x256xi1>
    %190 = arith.select %189, %171, %187 : vector<64x256xi1>, vector<64x256xf32>
    %191 = arith.truncf %190 : vector<64x256xf32> to vector<64x256xbf16>
    %c448 = arith.constant 448 : index
    %c0_58 = arith.constant 0 : index
    %192 = vector.load %arg9[%c448, %c0_58] : memref<576x256xbf16, #tpu.memory_space<vmem>>, vector<64x256xbf16>
    tpu.vector_store %arg9[%c448, %c0_58], %191 {strides = array<i32>} : memref<576x256xbf16, #tpu.memory_space<vmem>>, vector<64x256xbf16>,
    %193 = vector.extract_strided_slice %1 {offsets = [0, 17], sizes = [64, 239], strides = [1, 1]} : vector<64x256xf32> to vector<64x239xf32>
    %194 = vector.extract_strided_slice %1 {offsets = [0, 0], sizes = [64, 17], strides = [1, 1]} : vector<64x256xf32> to vector<64x17xf32>
    %195 = tpu.concatenate %193, %194 in 1 : vector<64x239xf32>, vector<64x17xf32> -> vector<64x256xf32>
    %c17_i32 = arith.constant 17 : i32
    %196 = vector.broadcast %c17_i32 : i32 to vector<1x256xi32>
    %197 = arith.addi %2, %196 : vector<1x256xi32>
    %c1_i32_59 = arith.constant 1 : i32
    %198 = vector.broadcast %c1_i32_59 : i32 to vector<1x256xi32>
    %199 = arith.addi %3, %198 : vector<1x256xi32>
    %c0_i32_60 = arith.constant 0 : i32
    %200 = vector.broadcast %c0_i32_60 : i32 to vector<1x256xi32>
    %201 = arith.cmpi sge, %197, %200 : vector<1x256xi32>
    %c256_i32_61 = arith.constant 256 : i32
    %202 = vector.broadcast %c256_i32_61 : i32 to vector<1x256xi32>
    %203 = arith.cmpi slt, %197, %202 : vector<1x256xi32>
    %204 = arith.andi %201, %203 : vector<1x256xi1>
    %c0_i32_62 = arith.constant 0 : i32
    %205 = vector.broadcast %c0_i32_62 : i32 to vector<1x256xi32>
    %206 = arith.cmpi sge, %199, %205 : vector<1x256xi32>
    %207 = arith.andi %204, %206 : vector<1x256xi1>
    %c16_i32_63 = arith.constant 16 : i32
    %208 = vector.broadcast %c16_i32_63 : i32 to vector<1x256xi32>
    %209 = arith.cmpi slt, %199, %208 : vector<1x256xi32>
    %210 = arith.andi %207, %209 : vector<1x256xi1>
    %cst_64 = arith.constant 0.000000e+00 : f32
    %211 = vector.broadcast %cst_64 : f32 to vector<64x256xf32>
    %212 = vector.shape_cast %210 : vector<1x256xi1> to vector<1x256xi1>
    %213 = vector.broadcast %212 : vector<1x256xi1> to vector<64x256xi1>
    %214 = arith.select %213, %195, %211 : vector<64x256xi1>, vector<64x256xf32>
    %215 = arith.truncf %214 : vector<64x256xf32> to vector<64x256xbf16>
    %c512 = arith.constant 512 : index
    %c0_65 = arith.constant 0 : index
    %216 = vector.load %arg9[%c512, %c0_65] : memref<576x256xbf16, #tpu.memory_space<vmem>>, vector<64x256xbf16>
    tpu.vector_store %arg9[%c512, %c0_65], %215 {strides = array<i32>} : memref<576x256xbf16, #tpu.memory_space<vmem>>, vector<64x256xbf16>,
    %c0_66 = arith.constant 0 : index
    %c0_67 = arith.constant 0 : index
    %217 = vector.load %arg3[%c0_66, %c0_67] : memref<128x576xbf16, #tpu.memory_space<vmem>>, vector<128x576xbf16>
    %c0_68 = arith.constant 0 : index
    %c0_69 = arith.constant 0 : index
    %218 = vector.load %arg9[%c0_68, %c0_69] : memref<576x256xbf16, #tpu.memory_space<vmem>>, vector<576x256xbf16>
    %cst_70 = arith.constant dense<0.000000e+00> : vector<128x256xf32>
    %219 = tpu.matmul %217, %218, %cst_70 {dimension_numbers = #tpu.dot_dimension_numbers<[1], [0], [0], [1], [0, 0, 1, 1], [], []>} : vector<128x576xbf16>, vector<576x256xbf16>, vector<128x256xf32> -> vector<128x256xf32>
    %c0_71 = arith.constant 0 : index
    %c0_72 = arith.constant 0 : index
    %220 = vector.load %arg4[%c0_71, %c0_72] : memref<128x1xf32, #tpu.memory_space<vmem>>, vector<128x1xf32>
    %221 = vector.broadcast %220 : vector<128x1xf32> to vector<128x256xf32>
    %222 = arith.mulf %219, %221 : vector<128x256xf32>
    %c0_73 = arith.constant 0 : index
    %c0_74 = arith.constant 0 : index
    %223 = vector.load %arg5[%c0_73, %c0_74] : memref<128x1xf32, #tpu.memory_space<vmem>>, vector<128x1xf32>
    %224 = vector.broadcast %223 : vector<128x1xf32> to vector<128x256xf32>
    %225 = arith.addf %222, %224 : vector<128x256xf32>
    %cst_75 = arith.constant 0.000000e+00 : f32
    %226 = vector.broadcast %cst_75 : f32 to vector<128x256xf32>
    %227 = arith.cmpf oge, %225, %226 : vector<128x256xf32>
    %c0_76 = arith.constant 0 : index
    %c0_77 = arith.constant 0 : index
    %228 = vector.load %arg6[%c0_76, %c0_77] : memref<128x1xf32, #tpu.memory_space<vmem>>, vector<128x1xf32>
    %229 = vector.broadcast %228 : vector<128x1xf32> to vector<128x256xf32>
    %230 = arith.mulf %229, %225 : vector<128x256xf32>
    %231 = arith.select %227, %225, %230 : vector<128x256xi1>, vector<128x256xf32>
    %c0_78 = arith.constant 0 : index
    %c0_79 = arith.constant 0 : index
    %c0_80 = arith.constant 0 : index
    %232 = vector.load %arg8[%c0_78, %c0_79, %c0_80] : memref<1x128x256xf32, #tpu.memory_space<vmem>>, vector<1x128x256xf32>
    %233 = vector.shape_cast %232 : vector<1x128x256xf32> to vector<128x256xf32>
    %234 = vector.shape_cast %231 : vector<128x256xf32> to vector<1x128x256xf32>
    tpu.vector_store %arg8[%c0_78, %c0_79, %c0_80], %234 {strides = array<i32>} : memref<1x128x256xf32, #tpu.memory_space<vmem>>, vector<1x128x256xf32>,
    return
  }
  func.func @transform_0(%arg0: i32, %arg1: i32) -> (i32, i32, i32) {
    %c0_i32 = arith.constant 0 : i32
    %c0_i32_0 = arith.constant 0 : i32
    %c0_i32_1 = arith.constant 0 : i32
    return %arg0, %c0_i32, %c0_i32_0 : i32, i32, i32
  }
  func.func @transform_1(%arg0: i32, %arg1: i32) -> (i32, i32) {
    %c0_i32 = arith.constant 0 : i32
    %c0_i32_0 = arith.constant 0 : i32
    return %arg1, %c0_i32 : i32, i32
  }
  func.func @transform_2(%arg0: i32, %arg1: i32) -> (i32, i32) {
    %c0_i32 = arith.constant 0 : i32
    %c0_i32_0 = arith.constant 0 : i32
    return %arg1, %c0_i32 : i32, i32
  }
  func.func @transform_3(%arg0: i32, %arg1: i32) -> (i32, i32) {
    %c0_i32 = arith.constant 0 : i32
    %c0_i32_0 = arith.constant 0 : i32
    return %arg1, %c0_i32 : i32, i32
  }
  func.func @transform_4(%arg0: i32, %arg1: i32) -> (i32, i32) {
    %c0_i32 = arith.constant 0 : i32
    %c0_i32_0 = arith.constant 0 : i32
    return %arg1, %c0_i32 : i32, i32
  }
  func.func @transform_5(%arg0: i32, %arg1: i32) -> (i32, i32) {
    %c0_i32 = arith.constant 0 : i32
    %c0_i32_0 = arith.constant 0 : i32
    %c0_i32_1 = arith.constant 0 : i32
    return %c0_i32, %c0_i32_0 : i32, i32
  }
  func.func @transform_6(%arg0: i32, %arg1: i32) -> (i32, i32, i32) {
    %c0_i32 = arith.constant 0 : i32
    %c0_i32_0 = arith.constant 0 : i32
    return %arg0, %arg1, %c0_i32 : i32, i32, i32
  }
}

</mosaic_0001>

<bundles_post_ra>
// kernel: conv2_5_6_forward.1
= control target key start
LH: loop header
LB: loop body
LE: loop exit
PB: predicated region body
PF: predicated region fallthrough
CT: control target
= control target key end

     0   :  { %s3732_s21 = smov 0   ;;  %s3734_s22 = smov 0   ;;  %s5304_s0 = inlined_call_operand.vmem [shape: f32[2,64,256], index: 0, kind: input, shape index: {}]   ;;  %s5305_s1 = inlined_call_operand.vmem [shape: bf16[128,576], index: 1, kind: input, shape index: {}]   ;;  %s5306_s2 = inlined_call_operand.vmem [shape: f32[128,1], index: 2, kind: input, shape index: {}]   ;;  %s5307_s3 = inlined_call_operand.vmem [shape: f32[128,1], index: 3, kind: input, shape index: {}]   ;;  %s5308_s4 = inlined_call_operand.vmem [shape: f32[128,1], index: 4, kind: input, shape index: {}]   ;;  %s5309_s5 = inlined_call_operand.vmem [shape: s32[1,256], index: 5, kind: input, shape index: {}]   ;;  %s5310_s6 = inlined_call_operand.vmem [shape: f32[2,128,256], index: 6, kind: output, shape index: {}]  }
   0x1   :  { %s3736_s23 = smov 0  }
   0x2 LB: > { %s28_s24 = sadd.s32 1, %s3682_s22  ;;  %p2884_p0 = scmp.ge.s32.totalorder %s3686_s23, 1  ;;  %s3686_s23 = sphi %s3736_s23, %s16_s23   ;;  %s3682_s22 = sphi %s3734_s22, %s5459_s22   ;;  %s3678_s21 = sphi %s3732_s21, %s5458_s21  }
   0x3   : > { %p30_p1 = scmp.ge.s32.totalorder %s28_s24, 2  ;;  %p271_p2 = scmp.lt.s32.totalorder %s3686_s23, 3 }
   0x5   : > { %s5461_s24 = smov (%p30_p1, %s28_s24), 0  ;;  %p272_p3 = pnand %p2884_p0, %p271_p2 }
   0x6   : > { %p327_p4 = scmp.lt.s32.totalorder (!%p272_p3), %s3678_s21, 1  ;;  %v385_v0 = vlaneseq (!%p272_p3)  ;;  %v3753_v1 = vld [vmem:[%s5309_s5] sm:$0x3] (!%p272_p3)  ;;  %v3688_v3 = vmov (!%p272_p3), 0   ;;  %s3689_s7 = smov (!%p272_p3), 17   ;;  %v5333_v48 = vmov (!%p272_p3), 0 }
   0x7   : > { %275 = sbr.rel (%p272_p3) target bundleno = 566 (0x236), region = 44  ;;  %v480_v2 = vadd.s32 (!%p272_p3), 4294967295, %v3753_v1  ;;  %3607 = vset.pattern.permute.xlu1 (!%p272_p3), %v3688_v3  ;;  %3606 = vset.pattern.permute.xlu0 (!%p272_p3), %v3688_v3  ;;  %vm640_vm2 = vcmp.ge.s32.totalorder (!%p272_p3), %v3753_v1, 0  ;;  %vm654_vm3 = vcmp.lt.s32.totalorder (!%p272_p3), %v3753_v1, 16  ;;  %s3690_s8 = smov (!%p272_p3), 16   ;;  %v5341_v54 = vmov (!%p272_p3), 0 }
   0x8   : > { %v490_v4 = vshrl.u32 (!%p272_p3), %v385_v0, 7  ;;  %v641_v31 = vsel (!%p272_p3), %vm640_vm2, 1, %v3688_v3  ;;  %v655_v35 = vsel (!%p272_p3), %vm654_vm3, 1, %v3688_v3  ;;  %v3929_v56 = vand.u32 (!%p272_p3), 127, %v385_v0  ;;  %s3691_s9 = smov (!%p272_p3), 127   ;;  %s3692_s10 = smov (!%p272_p3), 15  }
   0x9   : > { %vm487_vm0 = vcmp.ge.s32.totalorder (!%p272_p3), %v480_v2, 0  ;;  %vm501_vm1 = vcmp.lt.s32.totalorder (!%p272_p3), %v480_v2, 16  ;;  %v5343_v63 = vmov (!%p272_p3), 0  ;;  %v787_v0 = vadd.s32 (!%p272_p3), 1, %v3753_v1  ;;  %s3693_s11 = smov (!%p272_p3), 113   ;;  %s3694_s12 = smov (!%p272_p3), 1  }
   0xa   : > { %v3763_v5 = vsel (!%p272_p3), %vm487_vm0, 1, %v3688_v3  ;;  %v3765_v6 = vsub.s32 (!%p272_p3), 1, %v490_v4  ;;  %v3768_v7 = vsel (!%p272_p3), %vm501_vm1, 1, %v3688_v3  ;;  %v3817_v28 = vsub.s32 (!%p272_p3), 0, %v490_v4  ;;  %s3695_s13 = smov (!%p272_p3), 112   ;;  %s3696_s18 = smov (!%p272_p3), 111  }
   0xb   : > { %v632_v2 = vadd.s32 (!%p272_p3), 4294967280, %v3929_v56  ;;  %v5345_v4 = vmov (!%p272_p3), 0  ;;  %vm794_vm1 = vcmp.ge.s32.totalorder (!%p272_p3), %v787_v0, 0  ;;  %vm808_vm2 = vcmp.lt.s32.totalorder (!%p272_p3), %v787_v0, 16 }
   0xc   : > { %v496_v11 = vrot.slane (!%p272_p3), %v3763_v5, %v3765_v6  ;;  %v510_v12 = vrot.slane (!%p272_p3), %v3768_v7, %v3765_v6  ;;  %v645_v34 = vrot.slane (!%p272_p3), %v641_v31, %v3817_v28  ;;  %v649_v38 = vrot.slane (!%p272_p3), %v641_v31, %v3765_v6 }
   0xd   : > { %v659_v50 = vrot.slane (!%p272_p3), %v655_v35, %v3817_v28  ;;  %v663_v51 = vrot.slane (!%p272_p3), %v655_v35, %v3765_v6  ;;  %vm634_vm3 = vcmp.ge.s32.totalorder (!%p272_p3), %v632_v2, 0 }
   0xe   : > { %s5463_s21 = smov (!%p327_p4, %s3678_s21), 1  ;;  %vm3885_vm4 = vcmp.ne.s32.totalorder %v496_v11, 0  ;;  %vm3889_vm5 = vcmp.ne.s32.totalorder %v510_v12, 0  ;;  %vm3897_vm7 = vcmp.ne.s32.totalorder %v649_v38, 0  ;;  %vm3903_vm8 = vcmp.ne.s32.totalorder %v645_v34, 0 }
   0xf   : > { %s2939_s27 = sshll.u32 %s5463_s21, 7  ;;  %v5334_v48 = vsel %vm3889_vm5, 4294967295, %v5333_v48  ;;  %vm3909_vm9 = vcmp.ne.s32.totalorder %v659_v50, 0  ;;  %vm3913_vm10 = vcmp.ne.s32.totalorder %v663_v51, 0  ;;  %v3979_v11 = vsel %vm794_vm1, 1, %v3688_v3 }
  0x10   : > { %s331_s30 = scalar_lea.vmem %s5304_s0, %s2939_s27  ;;  %v5342_v54 = vsel %vm3913_vm10, 4294967295, %v5341_v54  ;;  %vm667_vm11 = vmand %vm3897_vm7, %vm3913_vm10  ;;  %v3982_v12 = vsel %vm808_vm2, 1, %v3688_v3  ;;  %v799_v38 = vrot.slane %v3979_v11, %v3817_v28 }
  0x11   : > { %v3773_v8 = vld [vmem:[%s331_s30 + $0x48] sm:$0xff]  ;;  %v3775_v9 = vld [vmem:[%s331_s30 + $0x58] sm:$0xff]  ;;  %v369_v18 = vld [vmem:[%s331_s30] sm:$0xff]  ;;  %v669_v55 = vsel %vm667_vm11, 1, %v3688_v3 }
  0x12   : > { %v3777_v10 = vld [vmem:[%s331_s30 + $0x8] sm:$0xff]  ;;  %v3785_v13 = vpack.i.bf16 %v3775_v9, %v3773_v8  ;;  %v372_v14 = vld [vmem:[%s331_s30 + $0x18] sm:$0xff]  ;;  %v371_v19 = vld [vmem:[%s331_s30 + $0x10] sm:$0xff]  ;;  %v677_v58 = vrot.slane %v669_v55, %v3817_v28 }
  0x13   : > { %v3787_v15 = vld [vmem:[%s331_s30 + $0x28] sm:$0xff]  ;;  %v3789_v16 = vld [vmem:[%s331_s30 + $0x38] sm:$0xff]  ;;  %v3792_v17 = vpack.i.bf16 %v372_v14, %v3777_v10  ;;  %v3796_v20 = vpack.i.bf16 %v371_v19, %v369_v18  ;;  %v3798_v21 = vld [vmem:[%s331_s30 + $0x20] sm:$0xff]  ;;  %v3855_v40 = vpack.i.bf16 %v3777_v10, %v369_v18  ;;  %v3859_v41 = vpack.i.bf16 %v372_v14, %v371_v19 }
  0x14   : > { %3297 = vrot.lane.b32.xlu1 %v3785_v13, %s3689_s7  ;;  %v3805_v22 = vpack.i.bf16 %v3789_v16, %v3787_v15  ;;  %v3807_v23 = vld [vmem:[%s331_s30 + $0x30] sm:$0xff]  ;;  %v3809_v24 = vld [vmem:[%s331_s30 + $0x40] sm:$0xff]  ;;  %v3813_v26 = vld [vmem:[%s331_s30 + $0x68] sm:$0xff]  ;;  %v3863_v42 = vpack.i.bf16 %v3787_v15, %v3798_v21  ;;  %v3934_v59 = vpack.c.bf16 %v372_v14, %v3777_v10  ;;  %v3939_v61 = vpack.c.bf16 %v371_v19, %v369_v18 }
  0x15   : > { %3287 = vrot.lane.b32.xlu0 %v3792_v17, %s3689_s7  ;;  %v3811_v25 = vld [vmem:[%s331_s30 + $0x50] sm:$0xff]  ;;  %v3815_v27 = vld [vmem:[%s331_s30 + $0x78] sm:$0xff]  ;;  %v3819_v29 = vld [vmem:[%s331_s30 + $0x60] sm:$0xff]  ;;  %v3835_v33 = vpack.i.bf16 %v3807_v23, %v3798_v21  ;;  %v3867_v43 = vpack.i.bf16 %v3789_v16, %v3807_v23  ;;  %v3871_v44 = vpack.i.bf16 %v3773_v8, %v3809_v24  ;;  %vm679_vm13 = vcmp.eq.s32.totalorder %v677_v58, 1 }
  0x16   : > { %v3821_v30 = vld [vmem:[%s331_s30 + $0x70] sm:$0xff]  ;;  %v3829_v32 = vpack.i.bf16 %v3811_v25, %v3809_v24  ;;  %v3841_v36 = vpack.i.bf16 %v3815_v27, %v3813_v26  ;;  %v3845_v37 = vpack.i.bf16 %v3813_v26, %v3819_v29  ;;  %v3875_v45 = vpack.i.bf16 %v3775_v9, %v3811_v25  ;;  %vm1003_vm12 = vmand %vm3903_vm8, %vm3909_vm9 }
  0x17   : > { %v3852_v39 = vpack.i.bf16 %v3821_v30, %v3819_v29  ;;  %v3879_v46 = vpack.i.bf16 %v3815_v27, %v3821_v30  ;;  %v1005_v57 = vsel %vm1003_vm12, 1, %v3688_v3  ;;  %v3945_v62 = vpack.c.bf16 %v3789_v16, %v3787_v15  ;;  %vm3947_vm15 = vmpackc.low %vm679_vm13, %vm679_vm13  ;;  %v2263_v55 = vld [vmem:[%s5306_s2 + $0x70] sm:$0xff] }
  0x18   : > { %3302 = vrot.lane.b32.xlu1 %v3796_v20, %s3689_s7  ;;  %v1010_v60 = vrot.slane %v1005_v57, %v3817_v28  ;;  %v5344_v63 = vsel %vm3947_vm15, 4294967295, %v5343_v63  ;;  %3039 = vmatprep.subr.msk.bf16.mxu0 %vm3947_vm15, %v3934_v59  ;;  %v3967_v1 = vpack.c.bf16 %v3807_v23, %v3798_v21  ;;  %v3976_v10 = vpack.c.bf16 %v3775_v9, %v3773_v8  ;;  %vm3986_vm11 = vmand %vm634_vm3, %vm3903_vm8 }
  0x19   : > { %3292 = vrot.lane.b32.xlu0 %v3805_v22, %s3689_s7  ;;  %v803_v15 = vrot.slane %v3979_v11, %v3765_v6  ;;  %v817_v16 = vrot.slane %v3982_v12, %v3765_v6  ;;  %v4005_v8 = vpack.c.bf16 %v3811_v25, %v3809_v24  ;;  %v4014_v9 = vpack.c.bf16 %v3815_v27, %v3813_v26 }
  0x1a   : > { %vm1015_vm14 = vcmp.eq.s32.totalorder %v1010_v60, 1  ;;  %v4023_v18 = vpack.c.bf16 %v3821_v30, %v3819_v29  ;;  %v4031_v19 = vadd.s32 128, %v3929_v56  ;;  %v5349_v23 = vmov 0 }
  0x1b   : > { %vm3953_vm0 = vmpackc.low %vm1015_vm14, %vm1015_vm14  ;;  %v492_v24 = vrot.slane %v3763_v5, %v3817_v28  ;;  %v506_v25 = vrot.slane %v3768_v7, %v3817_v28  ;;  %v939_v26 = vadd.s32 4294967295, %v3929_v56  ;;  %v5351_v27 = vmov 0 }
  0x1c   : > { %3312 = vrot.lane.b32.xlu1 %v3829_v32, %s3689_s7  ;;  %v5346_v4 = vsel %vm3953_vm0, 4294967295, %v5345_v4  ;;  %3042 = vmatpush1.bf16.msk.msra.mxu0 %vm3953_vm0, %v3939_v61  ;;  %v1252_v21 = vadd.s32 15, %v4031_v19  ;;  %v5353_v29 = vmov 0  ;;  %v5355_v5 = vmov 0  ;;  %vm5359_vm14 = vmand %vm3885_vm4, %vm3889_vm5 }
  0x1d   : > { %3307 = vrot.lane.b32.xlu0 %v3835_v33, %s3689_s7  ;;  %3045 = vmatprep.subr.msk.bf16.mxu0 %vm3947_vm15, %v3945_v62  ;;  %vm4074_vm1 = vcmp.ne.s32.totalorder %v492_v24, 0  ;;  %vm941_vm2 = vcmp.ge.s32.totalorder %v939_v26, 0  ;;  %vm4079_vm3 = vcmp.ne.s32.totalorder %v506_v25, 0  ;;  %v1381_v7 = vadd.s32 16, %v4031_v19  ;;  %vm5382_vm5 = vmand %vm3986_vm11, %vm3909_vm9 }
  0x1e   : > { %vm1256_vm8 = vcmp.lt.s32.totalorder %v1252_v21, 256  ;;  %v5352_v27 = vsel %vm4074_vm1, 4294967295, %v5351_v27  ;;  %v5354_v29 = vsel %vm4079_vm3, 4294967295, %v5353_v29  ;;  %v5357_v30 = vmov 0 }
  0x1f   : > { %vm4047_vm13 = vmand %vm1256_vm8, %vm3885_vm4  ;;  %vm1385_vm12 = vcmp.lt.s32.totalorder %v1381_v7, 256  ;;  %v1123_v35 = vadd.s32 1, %v4031_v19  ;;  %v5376_v24 = vmov 0 }
  0x20   : > { %3322 = vrot.lane.b32.xlu1 %v3852_v39, %s3689_s7  ;;  %3048 = vmatpush1.bf16.msk.msra.mxu0 %vm3953_vm0, %v3967_v1  ;;  %v5350_v23 = vsel %vm4047_vm13, 4294967295, %v5349_v23  ;;  %vm4085_vm8 = vmand %vm941_vm2, %vm4074_vm1 }
  0x21   : > { %3317 = vrot.lane.b32.xlu0 %v3841_v36, %s3689_s7  ;;  %3051 = vmatprep.subr.msk.bf16.mxu0 %vm3947_vm15, %v3976_v10  ;;  %v5356_v5 = vsel %vm4085_vm8, 4294967295, %v5355_v5  ;;  %vm4097_vm6 = vmand %vm1385_vm12, %vm3897_vm7 }
  0x22   : > { %v5358_v30 = vsel %vm4097_vm6, 4294967295, %v5357_v30 }
  0x24   : > { %3332 = vrot.lane.b32.xlu1 %v3796_v20, %s3690_s8  ;;  %3054 = vmatpush1.bf16.msk.msra.mxu0 %vm3953_vm0, %v4005_v8 }
  0x25   : > { %3327 = vrot.lane.b32.xlu0 %v3792_v17, %s3690_s8  ;;  %3057 = vmatprep.subr.msk.bf16.mxu0 %vm3947_vm15, %v4014_v9 }
  0x28   : > { %3342 = vrot.lane.b32.xlu1 %v3859_v41, %s3691_s9  ;;  %3060 = vmatpush1.bf16.msk.msra.mxu0 %vm3953_vm0, %v4023_v18 }
  0x29   : > { %3337 = vrot.lane.b32.xlu0 %v3855_v40, %s3691_s9 }
  0x2c   : > { %3352 = vrot.lane.b32.xlu1 %v3835_v33, %s3690_s8 }
  0x2d   : > { %3347 = vrot.lane.b32.xlu0 %v3805_v22, %s3690_s8 }
  0x30   : > { %3362 = vrot.lane.b32.xlu1 %v3867_v43, %s3691_s9 }
  0x31   : > { %3357 = vrot.lane.b32.xlu0 %v3863_v42, %s3691_s9 }
  0x34   : > { %3372 = vrot.lane.b32.xlu1 %v3829_v32, %s3690_s8 }
  0x35   : > { %3367 = vrot.lane.b32.xlu0 %v3785_v13, %s3690_s8 }
  0x38   : > { %3382 = vrot.lane.b32.xlu1 %v3875_v45, %s3691_s9 }
  0x39   : > { %3377 = vrot.lane.b32.xlu0 %v3871_v44, %s3691_s9 }
  0x3c   : > { %3392 = vrot.lane.b32.xlu1 %v3852_v39, %s3690_s8 }
  0x3d   : > { %3387 = vrot.lane.b32.xlu0 %v3841_v36, %s3690_s8 }
  0x40   : > { %3402 = vrot.lane.b32.xlu1 %v3879_v46, %s3691_s9 }
  0x41   : > { %3397 = vrot.lane.b32.xlu0 %v3845_v37, %s3691_s9 }
  0x44   : > { %3412 = vrot.lane.b32.xlu1 %v3796_v20, %s3692_s10 }
  0x45   : > { %3407 = vrot.lane.b32.xlu0 %v3792_v17, %s3692_s10 }
  0x48   : > { %3422 = vrot.lane.b32.xlu1 %v3859_v41, %s3693_s11 }
  0x49   : > { %3417 = vrot.lane.b32.xlu0 %v3855_v40, %s3693_s11 }
  0x4c   : > { %3432 = vrot.lane.b32.xlu1 %v3835_v33, %s3692_s10 }
  0x4d   : > { %3427 = vrot.lane.b32.xlu0 %v3805_v22, %s3692_s10 }
  0x50   : > { %3442 = vrot.lane.b32.xlu1 %v3867_v43, %s3693_s11 }
  0x51   : > { %3437 = vrot.lane.b32.xlu0 %v3863_v42, %s3693_s11 }
  0x54   : > { %3452 = vrot.lane.b32.xlu1 %v3829_v32, %s3692_s10 }
  0x55   : > { %3447 = vrot.lane.b32.xlu0 %v3785_v13, %s3692_s10 }
  0x58   : > { %3462 = vrot.lane.b32.xlu1 %v3875_v45, %s3693_s11 }
  0x59   : > { %3457 = vrot.lane.b32.xlu0 %v3871_v44, %s3693_s11 }
  0x5c   : > { %3472 = vrot.lane.b32.xlu1 %v3852_v39, %s3692_s10 }
  0x5d   : > { %3467 = vrot.lane.b32.xlu0 %v3841_v36, %s3692_s10 }
  0x60   : > { %3482 = vrot.lane.b32.xlu1 %v3879_v46, %s3693_s11 }
  0x61   : > { %3477 = vrot.lane.b32.xlu0 %v3845_v37, %s3693_s11  ;;  %s2940_s11 = sshll.u32 %s5463_s21, 8 }
  0x62   : > { %s5196_s14 = scalar_lea.vmem %s5310_s6, %s2940_s11 }
  0x64   : > { %3492 = vrot.lane.b32.xlu1 %v3796_v20, %s3694_s12  ;;  %v478_v20 = vadd.s32 4294967279, %v3929_v56 }
  0x65   : > { %3487 = vrot.lane.b32.xlu0 %v3792_v17, %s3694_s12  ;;  %v3610_v17 = vld [vmem:[%s5305_s1 + $0x4] ss:$20 sps:$4 sm:$0xff]  }
  0x66   : > { %1942 = vmatprep.mubr.bf16.mxu1 %v3610_v17  ;;  %vm481_vm7 = vcmp.ge.s32.totalorder %v478_v20, 0 }
  0x67   : > { %vm499_vm12 = vmand %vm481_vm7, %vm4074_vm1  ;;  %vm4167_vm7 = vcmp.ne.s32.totalorder %v803_v15, 0 }
  0x68   : > { %3502 = vrot.lane.b32.xlu1 %v3859_v41, %s3695_s13  ;;  %vm513_vm2 = vmand %vm499_vm12, %vm4079_vm3  ;;  %vm5370_vm12 = vcmask 138240  }
  0x69   : > { %3497 = vrot.lane.b32.xlu0 %v3855_v40, %s3695_s13  ;;  %v515_v31 = vsel %vm513_vm2, 1, %v3688_v3  ;;  %vm5371_vm6 = vmmov %vm5370_vm12 }
  0x6a   : > { %v520_v34 = vrot.slane %v515_v31, %v3817_v28  ;;  %vm5372_vm8 = vmmov %vm5371_vm6 }
  0x6c   : > { %3512 = vrot.lane.b32.xlu1 %v3835_v33, %s3694_s12  ;;  %vm4160_vm2 = vcmp.eq.s32.totalorder %v520_v34, 1 }
  0x6d   : > { %3507 = vrot.lane.b32.xlu0 %v3805_v22, %s3694_s12  ;;  %v3613_v22 = vld [vmem:[%s5305_s1 + $0xc] ss:$20 sps:$4 sm:$0xff]   ;;  %vm4192_vm1 = vmpackc.low %vm4160_vm2, %vm4160_vm2 }
  0x6e   : > { %2055 = vmatprep.mubr.bf16.mxu0 %v3613_v22 }
  0x70   : > { %3522 = vrot.lane.b32.xlu1 %v3867_v43, %s3695_s13 }
  0x71   : > { %3517 = vrot.lane.b32.xlu0 %v3863_v42, %s3695_s13 }
  0x74   : > { %3532 = vrot.lane.b32.xlu1 %v3829_v32, %s3694_s12 }
  0x75   : > { %3527 = vrot.lane.b32.xlu0 %v3785_v13, %s3694_s12  ;;  %v516_v13 = vsel %vm5359_vm14, 1, %v3688_v3  ;;  %vm4177_vm14 = vcmp.ne.s32.totalorder %v799_v38, 0 }
  0x76   : > { %v524_v32 = vrot.slane %v516_v13, %v3817_v28 }
  0x78   : > { %3542 = vrot.lane.b32.xlu1 %v3875_v45, %s3695_s13  ;;  %vm526_vm4 = vcmp.eq.s32.totalorder %v524_v32, 1  ;;  %v2250_v32 = vld [vmem:[%s5306_s2 + $0x8] sm:$0xff] }
  0x79   : > { %3537 = vrot.lane.b32.xlu0 %v3871_v44, %s3695_s13  ;;  %vm4171_vm0 = vmpackc.low %vm526_vm4, %vm526_vm4 }
  0x7a   : > { %vm5373_vm4 = vmmov %vm5371_vm6 }
  0x7b   : > { %vm5385_vm13 = vmmov %vm5373_vm4 }
  0x7c   : > { %3552 = vrot.lane.b32.xlu1 %v3852_v39, %s3694_s12  ;;  %v813_v39 = vrot.slane %v3982_v12, %v3817_v28  ;;  %vm5387_vm9 = vmmov %vm5373_vm4 }
  0x7d   : > { %3547 = vrot.lane.b32.xlu0 %v3841_v36, %s3694_s12  ;;  %vm5388_vm11 = vmmov %vm5373_vm4 }
  0x7e   : > { %vm4181_vm10 = vcmp.ne.s32.totalorder %v813_v39, 0 }
  0x80   : > { %3562 = vrot.lane.b32.xlu1 %v3879_v46, %s3695_s13 }
  0x81   : > { %3557 = vrot.lane.b32.xlu0 %v3845_v37, %s3695_s13 }
  0x84   : > { %3572 = vrot.lane.b32.xlu1 %v3859_v41, %s3696_s18 }
  0x85   : > { %3567 = vrot.lane.b32.xlu0 %v3855_v40, %s3696_s18 }
  0x86   : > { %v4148_v33 = vpop.permute.xlu1 %3297 }
  0x87   : > { %v3288_v36 = vpop.permute.xlu0 %3287  ;;  %v3300_v26 = vunpack.i.h.bf16 %v4148_v33 }
  0x88   : > { %3582 = vrot.lane.b32.xlu1 %v3867_v43, %s3696_s18  ;;  %v3290_v47 = vunpack.i.h.bf16 %v3288_v36  ;;  %v3289_v49 = vunpack.i.l.bf16 %v3288_v36 }
  0x89   : > { %3577 = vrot.lane.b32.xlu0 %v3863_v42, %s3696_s18 }
  0x8a   : > { %v3303_v40 = vpop.permute.xlu1 %3302 }
  0x8b   : > { %v3293_v50 = vpop.permute.xlu0 %3292  ;;  %v3305_v51 = vunpack.i.h.bf16 %v3303_v40  ;;  %v3304_v42 = vunpack.i.l.bf16 %v3303_v40 }
  0x8c   : > { %3592 = vrot.lane.b32.xlu1 %v3875_v45, %s3696_s18  ;;  %v3295_v22 = vunpack.i.h.bf16 %v3293_v50  ;;  %v3294_v6 = vunpack.i.l.bf16 %v3293_v50  ;;  %v2384_v45 = vld [vmem:[%s5307_s3 + $0x38] sm:$0xff] }
  0x8d   : > { %v446_v58 = vsel %vm5370_vm12, %v3304_v42, %v3289_v49  ;;  %v447_v60 = vsel %vm5371_vm6, %v3305_v51, %v3290_v47  ;;  %v470_v0 = vsel %vm5372_vm8, %v3289_v49, %v3304_v42  ;;  %v471_v2 = vsel %vm5373_vm4, %v3290_v47, %v3305_v51  ;;  %3587 = vrot.lane.b32.xlu0 %v3871_v44, %s3696_s18  ;;  %vm5384_vm12 = vmmov %vm5373_vm4  ;;  %v2249_v51 = vld [vmem:[%s5306_s2] sm:$0xff] }
  0x8e   : > { %v3313_v11 = vpop.permute.xlu1 %3312  ;;  %v2942_v15 = vpack.c.bf16 %v447_v60, %v446_v58  ;;  %v2945_v21 = vpack.c.bf16 %v471_v2, %v470_v0  ;;  %vm4201_vm6 = vcmp.ne.s32.totalorder %v817_v16, 0  ;;  %vm5378_vm8 = vcmp.lt.s32.totalorder %v1123_v35, 256  ;;  %v2251_v0 = vld [vmem:[%s5306_s2 + $0x10] sm:$0xff] }
  0x8f   : > { %v5377_v24 = vsel %vm4201_vm6, 4294967295, %v5376_v24  ;;  %vm4208_vm2 = vmand %vm5378_vm8, %vm4167_vm7  ;;  %v3299_v44 = vunpack.i.l.bf16 %v4148_v33  ;;  %v3308_v7 = vpop.permute.xlu0 %3307  ;;  %v3315_v20 = vunpack.i.h.bf16 %v3313_v11  ;;  %v3314_v17 = vunpack.i.l.bf16 %v3313_v11 }
  0x90   : > { %v3310_v12 = vunpack.i.h.bf16 %v3308_v7  ;;  %v3309_v16 = vunpack.i.l.bf16 %v3308_v7  ;;  %2943 = vmatprep.subr.msk.bf16.mxu1 %vm4171_vm0, %v2942_v15  ;;  %3602 = vrot.lane.b32.xlu1 %v3879_v46, %s3696_s18  ;;  %vm5381_vm8 = vmmov %vm5373_vm4  ;;  %v668_v46 = vsel %vm5382_vm5, 1, %v3688_v3 }
  0x91   : > { %v451_v13 = vsel %vm5373_vm4, %v3315_v20, %v3300_v26  ;;  %v450_v31 = vsel %vm5381_vm8, %v3314_v17, %v3299_v44  ;;  %2946 = vmatpush1.bf16.msk.msra.mxu1 %vm4192_vm1, %v2945_v21  ;;  %vm1133_vm3 = vmand %vm4208_vm2, %vm4201_vm6  ;;  %3597 = vrot.lane.b32.xlu0 %v3845_v37, %s3696_s18  ;;  %v475_v42 = vsel %vm5387_vm9, %v3300_v26, %v3315_v20  ;;  %vm599_vm2 = vcmask 130048  }
  0x92   : > { %v448_v33 = vsel %vm5373_vm4, %v3309_v16, %v3294_v6  ;;  %vm5383_vm8 = vmmov %vm5373_vm4  ;;  %v472_v35 = vsel %vm5384_vm12, %v3294_v6, %v3309_v16  ;;  %v473_v36 = vsel %vm5385_vm13, %v3295_v22, %v3310_v12  ;;  %v3323_v38 = vpop.permute.xlu1 %3322  ;;  %v1135_v37 = vsel %vm1133_vm3, 1, %v3688_v3 }
  0x93   : > { %v449_v34 = vsel %vm5383_vm8, %v3310_v12, %v3295_v22  ;;  %v3318_v14 = vpop.permute.xlu0 %3317  ;;  %v3325_v53 = vunpack.i.h.bf16 %v3323_v38  ;;  %v3324_v39 = vunpack.i.l.bf16 %v3323_v38  ;;  %v2951_v41 = vpack.c.bf16 %v473_v36, %v472_v35  ;;  %vm5386_vm5 = vmand %vm4177_vm14, %vm4181_vm10  ;;  %v2252_v12 = vld [vmem:[%s5306_s2 + $0x18] sm:$0xff] }
  0x94   : > { %v2948_v40 = vpack.c.bf16 %v449_v34, %v448_v33  ;;  %v3320_v47 = vunpack.i.h.bf16 %v3318_v14  ;;  %v3319_v49 = vunpack.i.l.bf16 %v3318_v14  ;;  %v1134_v50 = vsel %vm5386_vm5, 1, %v3688_v3  ;;  %2272 = vperm.xlu1 %3607, %v2250_v32   ;;  %vm5389_vm13 = vmmov %vm5373_vm4 }
  0x95   : > { %v474_v58 = vsel %vm5388_vm11, %v3299_v44, %v3314_v17  ;;  %v2954_v60 = vpack.c.bf16 %v451_v13, %v450_v31  ;;  %vm5390_vm3 = vmmov %vm5373_vm4  ;;  %v673_v21 = vrot.slane %v668_v46, %v3817_v28  ;;  %v1139_v7 = vrot.slane %v1134_v50, %v3817_v28  ;;  %2267 = vperm.xlu0 %3606, %v2249_v51   ;;  %v2253_v46 = vld [vmem:[%s5306_s2 + $0x20] sm:$0xff]  ;;  %v2254_v50 = vld [vmem:[%s5306_s2 + $0x28] sm:$0xff] }
  0x96   : > { %2949 = vmatprep.subr.msk.bf16.mxu1 %vm4171_vm0, %v2948_v40  ;;  %v453_v2 = vsel %vm5389_vm13, %v3325_v53, %v3320_v47  ;;  %v452_v11 = vsel %vm5390_vm3, %v3324_v39, %v3319_v49  ;;  %v3333_v15 = vpop.permute.xlu1 %3332  ;;  %v1143_v20 = vrot.slane %v1135_v37, %v3817_v28  ;;  %v2957_v6 = vpack.c.bf16 %v475_v42, %v474_v58  ;;  %vm5391_vm12 = vmmov %vm5390_vm3 }
  0x97   : > { %2952 = vmatpush1.bf16.msk.msra.mxu1 %vm4192_vm1, %v2951_v41  ;;  %v3328_v25 = vpop.permute.xlu0 %3327  ;;  %v3335_v26 = vunpack.i.h.bf16 %v3333_v15  ;;  %v3334_v44 = vunpack.i.l.bf16 %v3333_v15  ;;  %v477_v16 = vsel %vm5391_vm12, %v3320_v47, %v3325_v53  ;;  %vm5392_vm4 = vmmov %vm5390_vm3  ;;  %v2960_v31 = vpack.c.bf16 %v453_v2, %v452_v11 }
  0x98   : > { %2955 = vmatprep.subr.msk.bf16.mxu1 %vm4171_vm0, %v2954_v60  ;;  %v3330_v17 = vunpack.i.h.bf16 %v3328_v25  ;;  %v3329_v22 = vunpack.i.l.bf16 %v3328_v25  ;;  %2277 = vperm.xlu1 %3607, %v2251_v0   ;;  %v476_v13 = vsel %vm5392_vm4, %v3319_v49, %v3324_v39  ;;  %vm1081_vm8 = vcmask 1039360   ;;  %v2255_v60 = vld [vmem:[%s5306_s2 + $0x30] sm:$0xff]  ;;  %vm821_vm4 = vmand %vm4167_vm7, %vm4201_vm6 }
  0x99   : > { %vm4288_vm5 = vcmp.eq.s32.totalorder %v673_v21, 1  ;;  %vm4294_vm9 = vcmp.eq.s32.totalorder %v1139_v7, 1  ;;  %vm4298_vm11 = vcmp.eq.s32.totalorder %v1143_v20, 1  ;;  %2282 = vperm.xlu0 %3606, %v2252_v12   ;;  %v2963_v49 = vpack.c.bf16 %v477_v16, %v476_v13  ;;  %v2256_v12 = vld [vmem:[%s5306_s2 + $0x38] sm:$0xff]  ;;  %v2257_v16 = vld [vmem:[%s5306_s2 + $0x40] sm:$0xff] }
  0x9a   : > { %v601_v32 = vsel %vm599_vm2, %v3335_v26, %v3330_v17  ;;  %v600_v33 = vsel %vm599_vm2, %v3334_v44, %v3329_v22  ;;  %v3343_v34 = vpop.permute.xlu1 %3342  ;;  %v625_v40 = vsel %vm599_vm2, %v3330_v17, %v3335_v26  ;;  %v624_v37 = vsel %vm599_vm2, %v3329_v22, %v3334_v44  ;;  %vm4319_vm13 = vmpackc.low %vm4298_vm11, %vm4298_vm11 }
  0x9b   : > { %2958 = vmatpush1.bf16.msk.msra.mxu1 %vm4192_vm1, %v2957_v6  ;;  %v3338_v36 = vpop.permute.xlu0 %3337  ;;  %v3345_v38 = vunpack.i.h.bf16 %v3343_v34  ;;  %v3344_v14 = vunpack.i.l.bf16 %v3343_v34  ;;  %v2966_v58 = vpack.c.bf16 %v601_v32, %v600_v33  ;;  %v5399_v15 = vmov 0  ;;  %vm4339_vm3 = vmpackc.low %vm4294_vm9, %vm4294_vm9 }
  0x9c   : > { %2961 = vmatprep.subr.msk.bf16.mxu1 %vm4171_vm0, %v2960_v31  ;;  %v3340_v41 = vunpack.i.h.bf16 %v3338_v36  ;;  %v3339_v47 = vunpack.i.l.bf16 %v3338_v36  ;;  %2287 = vperm.xlu1 %3607, %v2253_v46   ;;  %v5400_v15 = vsel %vm4319_vm13, 4294967295, %v5399_v15  ;;  %v5403_v22 = vmov 0 }
  0x9d   : > { %v1083_v51 = vsel %vm1081_vm8, %v3344_v14, %v3345_v38  ;;  %v1115_v42 = vsel %vm1081_vm8, %v3345_v38, %v3344_v14  ;;  %2292 = vperm.xlu0 %3606, %v2254_v50   ;;  %v5404_v22 = vsel %vm4339_vm3, 4294967295, %v5403_v22  ;;  %v2969_v6 = vpack.c.bf16 %v625_v40, %v624_v37  ;;  %v2259_v50 = vld [vmem:[%s5306_s2 + $0x50] sm:$0xff] }
  0x9e   : > { %v1082_v0 = vsel %vm1081_vm8, %v3339_v47, %v3340_v41  ;;  %v1114_v2 = vsel %vm1081_vm8, %v3340_v41, %v3339_v47  ;;  %v3353_v11 = vpop.permute.xlu1 %3352  ;;  %v785_v40 = vadd.s32 4294967281, %v3929_v56  ;;  %v2258_v41 = vld [vmem:[%s5306_s2 + $0x48] sm:$0xff]  ;;  %vm5408_vm9 = vnez %v5334_v48 }
  0x9f   : > { %2964 = vmatpush1.bf16.msk.msra.mxu1 %vm4192_vm1, %v2963_v49  ;;  %v3348_v21 = vpop.permute.xlu0 %3347  ;;  %v3355_v25 = vunpack.i.h.bf16 %v3353_v11  ;;  %v3354_v26 = vunpack.i.l.bf16 %v3353_v11  ;;  %v4325_v44 = vpack.c.bf16 %v1115_v42, %v1114_v2  ;;  %vm4330_vm1 = vmpackc.low %vm4288_vm5, %vm4288_vm5  ;;  %v4334_v7 = vpack.c.bf16 %v1083_v51, %v1082_v0 }
  0xa0   : > { %2967 = vmatprep.subr.msk.bf16.mxu1 %vm3947_vm15, %v2966_v58  ;;  %v3350_v20 = vunpack.i.h.bf16 %v3348_v21  ;;  %v3349_v17 = vunpack.i.l.bf16 %v3348_v21  ;;  %2297 = vperm.xlu1 %3607, %v2255_v60   ;;  %vm788_vm12 = vcmp.ge.s32.totalorder %v785_v40, 0 }
  0xa1   : > { %3063 = vmatprep.subr.msk.bf16.mxu0 %vm4319_vm13, %v4325_v44  ;;  %2302 = vperm.xlu0 %3606, %v2256_v12   ;;  %vm4403_vm5 = vmand %vm788_vm12, %vm4177_vm14  ;;  %vm5410_vm12 = vnez %v5354_v29 }
  0xa2   : > { %v603_v13 = vsel %vm599_vm2, %v3355_v25, %v3350_v20  ;;  %v627_v31 = vsel %vm599_vm2, %v3350_v20, %v3355_v25  ;;  %v602_v46 = vsel %vm599_vm2, %v3354_v26, %v3349_v17  ;;  %v626_v32 = vsel %vm599_vm2, %v3349_v17, %v3354_v26  ;;  %v3363_v33 = vpop.permute.xlu1 %3362  ;;  %3066 = vmatpush1.bf16.msk.msra.mxu0 %vm4339_vm3, %v4334_v7  ;;  %v2260_v25 = vld [vmem:[%s5306_s2 + $0x58] sm:$0xff]  ;;  %v2261_v26 = vld [vmem:[%s5306_s2 + $0x60] sm:$0xff]  ;;  %vm820_vm14 = vmand %vm4403_vm5, %vm4181_vm10 }
  0xa3   : > { %2970 = vmatpush1.bf16.msk.msra.mxu1 %vm4330_vm1, %v2969_v6  ;;  %v3358_v34 = vpop.permute.xlu0 %3357  ;;  %v3365_v35 = vunpack.i.h.bf16 %v3363_v33  ;;  %v3364_v36 = vunpack.i.l.bf16 %v3363_v33  ;;  %v2972_v38 = vpack.c.bf16 %v603_v13, %v602_v46  ;;  %v2975_v14 = vpack.c.bf16 %v627_v31, %v626_v32 }
  0xa4   : > { %v3360_v53 = vunpack.i.h.bf16 %v3358_v34  ;;  %v3359_v39 = vunpack.i.l.bf16 %v3358_v34  ;;  %2307 = vperm.xlu1 %3607, %v2257_v16   ;;  %vm5407_vm10 = vnez %v5350_v23  ;;  %v2378_v34 = vld [vmem:[%s5307_s3 + $0x8] sm:$0xff] }
  0xa5   : > { %v1085_v47 = vsel %vm1081_vm8, %v3364_v36, %v3365_v35  ;;  %v1117_v49 = vsel %vm1081_vm8, %v3365_v35, %v3364_v36  ;;  %2973 = vmatprep.subr.msk.bf16.mxu1 %vm3947_vm15, %v2972_v38  ;;  %2312 = vperm.xlu0 %3606, %v2258_v41   ;;  %v2262_v38 = vld [vmem:[%s5306_s2 + $0x68] sm:$0xff]  ;;  %vm5409_vm11 = vmand %vm5407_vm10, %vm5408_vm9 }
  0xa6   : > { %v1084_v37 = vsel %vm1081_vm8, %v3359_v39, %v3360_v53  ;;  %v1116_v56 = vsel %vm1081_vm8, %v3360_v53, %v3359_v39  ;;  %v3373_v51 = vpop.permute.xlu1 %3372 }
  0xa7   : > { %2976 = vmatpush1.bf16.msk.msra.mxu1 %vm4330_vm1, %v2975_v14  ;;  %v4376_v42 = vpack.c.bf16 %v1117_v49, %v1116_v56  ;;  %v4378_v58 = vpack.c.bf16 %v1085_v47, %v1084_v37  ;;  %v3368_v60 = vpop.permute.xlu0 %3367  ;;  %v3375_v0 = vunpack.i.h.bf16 %v3373_v51  ;;  %v3374_v2 = vunpack.i.l.bf16 %v3373_v51 }
  0xa8   : > { %v3370_v11 = vunpack.i.h.bf16 %v3368_v60  ;;  %v3369_v21 = vunpack.i.l.bf16 %v3368_v60  ;;  %2317 = vperm.xlu1 %3607, %v2259_v50   ;;  %v823_v47 = vsel %vm821_vm4, 1, %v3688_v3  ;;  %vm5411_vm4 = vnez %v5352_v27 }
  0xa9   : > { %3069 = vmatprep.subr.msk.bf16.mxu0 %vm4319_vm13, %v4376_v42  ;;  %2322 = vperm.xlu0 %3606, %v2260_v25   ;;  %v831_v57 = vrot.slane %v823_v47, %v3817_v28  ;;  %v2377_v25 = vld [vmem:[%s5307_s3] sm:$0xff]  ;;  %vm1261_vm5 = vmand %vm5411_vm4, %vm5410_vm12 }
  0xaa   : > { %v605_v20 = vsel %vm599_vm2, %v3375_v0, %v3370_v11  ;;  %v629_v17 = vsel %vm599_vm2, %v3370_v11, %v3375_v0  ;;  %v604_v6 = vsel %vm599_vm2, %v3374_v2, %v3369_v21  ;;  %v628_v12 = vsel %vm599_vm2, %v3369_v21, %v3374_v2  ;;  %3072 = vmatpush1.bf16.msk.msra.mxu0 %vm4339_vm3, %v4378_v58  ;;  %v3383_v16 = vpop.permute.xlu1 %3382  ;;  %v2264_v2 = vld [vmem:[%s5306_s2 + $0x78] sm:$0xff] }
  0xab   : > { %v2978_v13 = vpack.c.bf16 %v605_v20, %v604_v6  ;;  %v2981_v31 = vpack.c.bf16 %v629_v17, %v628_v12  ;;  %v3378_v46 = vpop.permute.xlu0 %3377  ;;  %v3385_v32 = vunpack.i.h.bf16 %v3383_v16  ;;  %v3384_v33 = vunpack.i.l.bf16 %v3383_v16 }
  0xac   : > { %v3380_v35 = vunpack.i.h.bf16 %v3378_v46  ;;  %v3379_v36 = vunpack.i.l.bf16 %v3378_v46  ;;  %2327 = vperm.xlu1 %3607, %v2261_v26   ;;  %v822_v11 = vsel %vm820_vm14, 1, %v3688_v3  ;;  %v1264_v21 = vsel %vm5409_vm11, 1, %v3688_v3 }
  0xad   : > { %v1087_v14 = vsel %vm1081_vm8, %v3384_v33, %v3385_v32  ;;  %v1119_v53 = vsel %vm1081_vm8, %v3385_v32, %v3384_v33  ;;  %2979 = vmatprep.subr.msk.bf16.mxu1 %vm3947_vm15, %v2978_v13  ;;  %2332 = vperm.xlu0 %3606, %v2262_v38   ;;  %v827_v33 = vrot.slane %v822_v11, %v3817_v28  ;;  %vm4485_vm14 = vcmp.eq.s32.totalorder %v831_v57, 1  ;;  %v2380_v57 = vld [vmem:[%s5307_s3 + $0x18] sm:$0xff] }
  0xae   : > { %v1086_v39 = vsel %vm1081_vm8, %v3379_v36, %v3380_v35  ;;  %v1118_v40 = vsel %vm1081_vm8, %v3380_v35, %v3379_v36  ;;  %2982 = vmatpush1.bf16.msk.msra.mxu1 %vm4330_vm1, %v2981_v31  ;;  %v3393_v41 = vpop.permute.xlu1 %3392  ;;  %v1263_v35 = vsel %vm1261_vm5, 1, %v3688_v3  ;;  %vm4521_vm9 = vmpackc.low %vm4485_vm14, %vm4485_vm14 }
  0xaf   : > { %v4431_v49 = vpack.c.bf16 %v1119_v53, %v1118_v40  ;;  %v4433_v50 = vpack.c.bf16 %v1087_v14, %v1086_v39  ;;  %v3388_v37 = vpop.permute.xlu0 %3387  ;;  %v3395_v56 = vunpack.i.h.bf16 %v3393_v41  ;;  %v3394_v51 = vunpack.i.l.bf16 %v3393_v41  ;;  %v2379_v53 = vld [vmem:[%s5307_s3 + $0x10] sm:$0xff] }
  0xb0   : > { %v3390_v60 = vunpack.i.h.bf16 %v3388_v37  ;;  %v3389_v0 = vunpack.i.l.bf16 %v3388_v37  ;;  %2337 = vperm.xlu1 %3607, %v2263_v55   ;;  %v1272_v14 = vrot.slane %v1264_v21, %v3817_v28  ;;  %v2381_v21 = vld [vmem:[%s5307_s3 + $0x20] sm:$0xff] }
  0xb1   : > { %3075 = vmatprep.subr.msk.bf16.mxu0 %vm4319_vm13, %v4431_v49  ;;  %2342 = vperm.xlu0 %3606, %v2264_v2  }
  0xb2   : > { %v607_v26 = vsel %vm599_vm2, %v3395_v56, %v3390_v60  ;;  %v631_v20 = vsel %vm599_vm2, %v3390_v60, %v3395_v56  ;;  %v606_v17 = vsel %vm599_vm2, %v3394_v51, %v3389_v0  ;;  %v630_v23 = vsel %vm599_vm2, %v3389_v0, %v3394_v51  ;;  %3078 = vmatpush1.bf16.msk.msra.mxu0 %vm4339_vm3, %v4433_v50  ;;  %v3403_v48 = vpop.permute.xlu1 %3402 }
  0xb3   : > { %v2984_v6 = vpack.c.bf16 %v607_v26, %v606_v17  ;;  %v2987_v12 = vpack.c.bf16 %v631_v20, %v630_v23  ;;  %v3398_v16 = vpop.permute.xlu0 %3397  ;;  %v3405_v13 = vunpack.i.h.bf16 %v3403_v48  ;;  %v3404_v31 = vunpack.i.l.bf16 %v3403_v48 }
  0xb4   : > { %v3400_v46 = vunpack.i.h.bf16 %v3398_v16  ;;  %v3399_v32 = vunpack.i.l.bf16 %v3398_v16  ;;  %2395 = vperm.xlu1 %3607, %v2377_v25   ;;  %vm5323_vm2 = vcmask 121856   ;;  %v1268_v60 = vrot.slane %v1263_v35, %v3817_v28 }
  0xb5   : > { %v1089_v36 = vsel %vm1081_vm8, %v3404_v31, %v3405_v13  ;;  %v1121_v38 = vsel %vm1081_vm8, %v3405_v13, %v3404_v31  ;;  %2985 = vmatprep.subr.msk.bf16.mxu1 %vm3947_vm15, %v2984_v6  ;;  %2400 = vperm.xlu0 %3606, %v2378_v34   ;;  %vm4504_vm10 = vcmp.eq.s32.totalorder %v1272_v14, 1  ;;  %v2382_v34 = vld [vmem:[%s5307_s3 + $0x28] sm:$0xff] }
  0xb6   : > { %v1088_v55 = vsel %vm1081_vm8, %v3399_v32, %v3400_v46  ;;  %v1120_v27 = vsel %vm1081_vm8, %v3400_v46, %v3399_v32  ;;  %2988 = vmatpush1.bf16.msk.msra.mxu1 %vm4330_vm1, %v2987_v12  ;;  %v3413_v39 = vpop.permute.xlu1 %3412  ;;  %vm4494_vm8 = vcmp.eq.s32.totalorder %v827_v33, 1  ;;  %vm5322_vm1 = vcmask 924672   ;;  %vm4549_vm5 = vmpackc.low %vm4504_vm10, %vm4504_vm10  ;;  %v2540_v46 = vld [vmem:[%s5308_s4 + $0x18] sm:$0xff] }
  0xb7   : > { %v4489_v41 = vpack.c.bf16 %v1121_v38, %v1120_v27  ;;  %v4491_v47 = vpack.c.bf16 %v1089_v36, %v1088_v55  ;;  %v3408_v37 = vpop.permute.xlu0 %3407  ;;  %v3415_v56 = vunpack.i.h.bf16 %v3413_v39  ;;  %v3414_v51 = vunpack.i.l.bf16 %v3413_v39  ;;  %vm4528_vm11 = vmpackc.low %vm4494_vm8, %vm4494_vm8  ;;  %v2383_v38 = vld [vmem:[%s5307_s3 + $0x30] sm:$0xff]  ;;  %v3646_v39 = vld [vmem:[%s5305_s1 + $0x118] ss:$20 sps:$4 sm:$0xff]  }
  0xb8   : > { %v3410_v0 = vunpack.i.h.bf16 %v3408_v37  ;;  %v3409_v2 = vunpack.i.l.bf16 %v3408_v37  ;;  %2405 = vperm.xlu1 %3607, %v2379_v53   ;;  %vm1273_vm4 = vcmp.eq.s32.totalorder %v1268_v60, 1  ;;  %vm5426_vm8 = vnez %v5356_v5  ;;  %v3643_v27 = vld [vmem:[%s5305_s1 + $0x60] ss:$20 sps:$4 sm:$0xff]  }
  0xb9   : > { %3081 = vmatprep.subr.msk.bf16.mxu0 %vm4319_vm13, %v4489_v41  ;;  %2410 = vperm.xlu0 %3606, %v2380_v57   ;;  %vm4553_vm14 = vmpackc.low %vm1273_vm4, %vm1273_vm4  ;;  %v2385_v57 = vld [vmem:[%s5307_s3 + $0x40] sm:$0xff]  ;;  %vm5428_vm4 = vnez %v5358_v30  ;;  %vm5431_vm13 = vcmask 121856  }
  0xba   : > { %v754_v25 = vsel %vm5323_vm2, %v3415_v56, %v3410_v0  ;;  %v778_v26 = vsel %vm5323_vm2, %v3410_v0, %v3415_v56  ;;  %v753_v20 = vsel %vm5323_vm2, %v3414_v51, %v3409_v2  ;;  %v777_v17 = vsel %vm5323_vm2, %v3409_v2, %v3414_v51  ;;  %3084 = vmatpush1.bf16.msk.msra.mxu0 %vm4339_vm3, %v4491_v47  ;;  %v3423_v23 = vpop.permute.xlu1 %3422  ;;  %vm5427_vm10 = vmand %vm5426_vm8, %vm5410_vm12 }
  0xbb   : > { %v2990_v6 = vpack.c.bf16 %v754_v25, %v753_v20  ;;  %v2993_v12 = vpack.c.bf16 %v778_v26, %v777_v17  ;;  %v3418_v16 = vpop.permute.xlu0 %3417  ;;  %v3425_v13 = vunpack.i.h.bf16 %v3423_v23  ;;  %v3424_v31 = vunpack.i.l.bf16 %v3423_v23  ;;  %vm5432_vm3 = vmmov %vm5431_vm13 }
  0xbc   : > { %v3420_v32 = vunpack.i.h.bf16 %v3418_v16  ;;  %v3419_v33 = vunpack.i.l.bf16 %v3418_v16  ;;  %2415 = vperm.xlu1 %3607, %v2381_v21   ;;  %vm5433_vm15 = vmmov %vm5432_vm3  ;;  %vm906_vm12 = vcmask 7168  }
  0xbd   : > { %v1212_v35 = vsel %vm5322_vm1, %v3424_v31, %v3425_v13  ;;  %v1244_v36 = vsel %vm5322_vm1, %v3425_v13, %v3424_v31  ;;  %2991 = vmatprep.subr.msk.bf16.mxu1 %vm4521_vm9, %v2990_v6  ;;  %2420 = vperm.xlu0 %3606, %v2382_v34   ;;  %vm5434_vm6 = vmmov %vm5432_vm3 }
  0xbe   : > { %v1211_v14 = vsel %vm5322_vm1, %v3419_v33, %v3420_v32  ;;  %v1243_v53 = vsel %vm5322_vm1, %v3420_v32, %v3419_v33  ;;  %2994 = vmatpush1.bf16.msk.msra.mxu1 %vm4528_vm11, %v2993_v12  ;;  %v3433_v55 = vpop.permute.xlu1 %3432  ;;  %v2386_v32 = vld [vmem:[%s5307_s3 + $0x48] sm:$0xff] }
  0xbf   : > { %v4557_v40 = vpack.c.bf16 %v1244_v36, %v1243_v53  ;;  %v4559_v37 = vpack.c.bf16 %v1212_v35, %v1211_v14  ;;  %v3428_v56 = vpop.permute.xlu0 %3427  ;;  %v3435_v51 = vunpack.i.h.bf16 %v3433_v55  ;;  %v3434_v60 = vunpack.i.l.bf16 %v3433_v55  ;;  %v2387_v35 = vld [vmem:[%s5307_s3 + $0x50] sm:$0xff] }
  0xc0   : > { %v3430_v0 = vunpack.i.h.bf16 %v3428_v56  ;;  %v3429_v2 = vunpack.i.l.bf16 %v3428_v56  ;;  %2425 = vperm.xlu1 %3607, %v2383_v38  }
  0xc1   : > { %3087 = vmatprep.subr.msk.bf16.mxu0 %vm4549_vm5, %v4557_v40  ;;  %2430 = vperm.xlu0 %3606, %v2384_v45   ;;  %v2388_v45 = vld [vmem:[%s5307_s3 + $0x58] sm:$0xff] }
  0xc2   : > { %v756_v11 = vsel %vm5323_vm2, %v3435_v51, %v3430_v0  ;;  %v780_v21 = vsel %vm5323_vm2, %v3430_v0, %v3435_v51  ;;  %v755_v25 = vsel %vm5323_vm2, %v3434_v60, %v3429_v2  ;;  %v779_v26 = vsel %vm5323_vm2, %v3429_v2, %v3434_v60  ;;  %3090 = vmatpush1.bf16.msk.msra.mxu0 %vm4553_vm14, %v4559_v37  ;;  %v3443_v20 = vpop.permute.xlu1 %3442 }
  0xc3   : > { %v2996_v17 = vpack.c.bf16 %v756_v11, %v755_v25  ;;  %v2999_v23 = vpack.c.bf16 %v780_v21, %v779_v26  ;;  %v3438_v6 = vpop.permute.xlu0 %3437  ;;  %v3445_v12 = vunpack.i.h.bf16 %v3443_v20  ;;  %v3444_v16 = vunpack.i.l.bf16 %v3443_v20 }
  0xc4   : > { %v3440_v13 = vunpack.i.h.bf16 %v3438_v6  ;;  %v3439_v31 = vunpack.i.l.bf16 %v3438_v6  ;;  %2435 = vperm.xlu1 %3607, %v2385_v57   ;;  %v2389_v57 = vld [vmem:[%s5307_s3 + $0x60] sm:$0xff] }
  0xc5   : > { %v1214_v33 = vsel %vm5322_vm1, %v3444_v16, %v3445_v12  ;;  %v1246_v34 = vsel %vm5322_vm1, %v3445_v12, %v3444_v16  ;;  %2997 = vmatprep.subr.msk.bf16.mxu1 %vm4521_vm9, %v2996_v17  ;;  %2440 = vperm.xlu0 %3606, %v2386_v32   ;;  %v2390_v32 = vld [vmem:[%s5307_s3 + $0x68] sm:$0xff] }
  0xc6   : > { %v1213_v36 = vsel %vm5322_vm1, %v3439_v31, %v3440_v13  ;;  %v1245_v38 = vsel %vm5322_vm1, %v3440_v13, %v3439_v31  ;;  %3000 = vmatpush1.bf16.msk.msra.mxu1 %vm4528_vm11, %v2999_v23  ;;  %v3453_v14 = vpop.permute.xlu1 %3452 }
  0xc7   : > { %v4591_v53 = vpack.c.bf16 %v1246_v34, %v1245_v38  ;;  %v4593_v55 = vpack.c.bf16 %v1214_v33, %v1213_v36  ;;  %v3448_v56 = vpop.permute.xlu0 %3447  ;;  %v3455_v51 = vunpack.i.h.bf16 %v3453_v14  ;;  %v3454_v60 = vunpack.i.l.bf16 %v3453_v14 }
  0xc8   : > { %v3450_v0 = vunpack.i.h.bf16 %v3448_v56  ;;  %v3449_v2 = vunpack.i.l.bf16 %v3448_v56  ;;  %2445 = vperm.xlu1 %3607, %v2387_v35   ;;  %v2391_v35 = vld [vmem:[%s5307_s3 + $0x70] sm:$0xff] }
  0xc9   : > { %3093 = vmatprep.subr.msk.bf16.mxu0 %vm4549_vm5, %v4591_v53  ;;  %2450 = vperm.xlu0 %3606, %v2388_v45  }
  0xca   : > { %v758_v11 = vsel %vm5323_vm2, %v3455_v51, %v3450_v0  ;;  %v782_v21 = vsel %vm5323_vm2, %v3450_v0, %v3455_v51  ;;  %v757_v25 = vsel %vm5323_vm2, %v3454_v60, %v3449_v2  ;;  %v781_v26 = vsel %vm5323_vm2, %v3449_v2, %v3454_v60  ;;  %3096 = vmatpush1.bf16.msk.msra.mxu0 %vm4553_vm14, %v4593_v55  ;;  %v3463_v20 = vpop.permute.xlu1 %3462 }
  0xcb   : > { %v3002_v17 = vpack.c.bf16 %v758_v11, %v757_v25  ;;  %v3005_v23 = vpack.c.bf16 %v782_v21, %v781_v26  ;;  %v3458_v6 = vpop.permute.xlu0 %3457  ;;  %v3465_v12 = vunpack.i.h.bf16 %v3463_v20  ;;  %v3464_v16 = vunpack.i.l.bf16 %v3463_v20  ;;  %v2392_v11 = vld [vmem:[%s5307_s3 + $0x78] sm:$0xff]  ;;  %v2537_v26 = vld [vmem:[%s5308_s4] sm:$0xff] }
  0xcc   : > { %v3460_v13 = vunpack.i.h.bf16 %v3458_v6  ;;  %v3459_v31 = vunpack.i.l.bf16 %v3458_v6  ;;  %2455 = vperm.xlu1 %3607, %v2389_v57   ;;  %v951_v21 = vsel %vm5427_vm10, 1, %v3688_v3  ;;  %vm5447_vm10 = vnez %v5346_v4  ;;  %v3656_v4 = vld [vmem:[%s5305_s1 + $0xfc] ss:$20 sps:$4 sm:$0xff]  }
  0xcd   : > { %v1216_v33 = vsel %vm5322_vm1, %v3464_v16, %v3465_v12  ;;  %v1248_v34 = vsel %vm5322_vm1, %v3465_v12, %v3464_v16  ;;  %3003 = vmatprep.subr.msk.bf16.mxu1 %vm4521_vm9, %v3002_v17  ;;  %2460 = vperm.xlu0 %3606, %v2390_v32   ;;  %v956_v32 = vrot.slane %v951_v21, %v3817_v28 }
  0xce   : > { %v1215_v36 = vsel %vm5322_vm1, %v3459_v31, %v3460_v13  ;;  %v1247_v38 = vsel %vm5322_vm1, %v3460_v13, %v3459_v31  ;;  %3006 = vmatpush1.bf16.msk.msra.mxu1 %vm4528_vm11, %v3005_v23  ;;  %v3473_v14 = vpop.permute.xlu1 %3472  ;;  %vm5429_vm1 = vnez %v5342_v54 }
  0xcf   : > { %v4625_v56 = vpack.c.bf16 %v1248_v34, %v1247_v38  ;;  %v4627_v51 = vpack.c.bf16 %v1216_v33, %v1215_v36  ;;  %v3468_v60 = vpop.permute.xlu0 %3467  ;;  %v3475_v0 = vunpack.i.h.bf16 %v3473_v14  ;;  %v3474_v2 = vunpack.i.l.bf16 %v3473_v14  ;;  %vm5430_vm2 = vmand %vm5428_vm4, %vm5429_vm1  ;;  %v2538_v33 = vld [vmem:[%s5308_s4 + $0x8] sm:$0xff]  ;;  %v2539_v38 = vld [vmem:[%s5308_s4 + $0x10] sm:$0xff] }
  0xd0   : > { %v3470_v45 = vunpack.i.h.bf16 %v3468_v60  ;;  %v3469_v57 = vunpack.i.l.bf16 %v3468_v60  ;;  %2465 = vperm.xlu1 %3607, %v2391_v35   ;;  %v1393_v25 = vsel %vm5430_vm2, 1, %v3688_v3  ;;  %vm4677_vm2 = vcmp.eq.s32.totalorder %v956_v32, 1  ;;  %v3614_v32 = vld [vmem:[%s5305_s1 + $0x2c] ss:$20 sps:$4 sm:$0xff]  }
  0xd1   : > { %3099 = vmatprep.subr.msk.bf16.mxu0 %vm4549_vm5, %v4625_v56  ;;  %2470 = vperm.xlu0 %3606, %v2392_v11   ;;  %v1401_v36 = vrot.slane %v1393_v25, %v3817_v28  ;;  %vm1339_vm1 = vcmask 916480  }
  0xd2   : > { %v760_v20 = vsel %vm5431_vm13, %v3475_v0, %v3470_v45  ;;  %v784_v17 = vsel %vm5432_vm3, %v3470_v45, %v3475_v0  ;;  %v759_v5 = vsel %vm5433_vm15, %v3474_v2, %v3469_v57  ;;  %v783_v29 = vsel %vm5434_vm6, %v3469_v57, %v3474_v2  ;;  %3102 = vmatpush1.bf16.msk.msra.mxu0 %vm4553_vm14, %v4627_v51  ;;  %v3483_v30 = vpop.permute.xlu1 %3482 }
  0xd3   : > { %v3008_v54 = vpack.c.bf16 %v760_v20, %v759_v5  ;;  %v3011_v23 = vpack.c.bf16 %v784_v17, %v783_v29  ;;  %v3478_v6 = vpop.permute.xlu0 %3477  ;;  %v3485_v12 = vunpack.i.h.bf16 %v3483_v30  ;;  %v3484_v16 = vunpack.i.l.bf16 %v3483_v30  ;;  %v2541_v17 = vld [vmem:[%s5308_s4 + $0x20] sm:$0xff] }
  0xd4   : > { %v3480_v13 = vunpack.i.h.bf16 %v3478_v6  ;;  %v3479_v31 = vunpack.i.l.bf16 %v3478_v6  ;;  %2555 = vperm.xlu1 %3607, %v2537_v26   ;;  %vm5435_vm15 = vcmask 924672   ;;  %v1510_v20 = vadd.s32 17, %v4031_v19 }
  0xd5   : > { %v1218_v34 = vsel %vm5435_vm15, %v3484_v16, %v3485_v12  ;;  %vm5436_vm6 = vmmov %vm5435_vm15  ;;  %3009 = vmatprep.subr.msk.bf16.mxu1 %vm4521_vm9, %v3008_v54  ;;  %2560 = vperm.xlu0 %3606, %v2538_v33   ;;  %vm4687_vm9 = vcmp.eq.s32.totalorder %v1401_v36, 1 }
  0xd6   : > { %v1250_v35 = vsel %vm5436_vm6, %v3485_v12, %v3484_v16  ;;  %vm5437_vm13 = vmmov %vm5436_vm6  ;;  %3012 = vmatpush1.bf16.msk.msra.mxu1 %vm4528_vm11, %v3011_v23  ;;  %v3493_v0 = vpop.permute.xlu1 %3492  ;;  %vm1514_vm4 = vcmp.lt.s32.totalorder %v1510_v20, 256 }
  0xd7   : > { %v1217_v14 = vsel %vm5437_vm13, %v3479_v31, %v3480_v13  ;;  %vm5438_vm3 = vmmov %vm5436_vm6  ;;  %v3488_v48 = vpop.permute.xlu0 %3487  ;;  %v3495_v57 = vunpack.i.h.bf16 %v3493_v0  ;;  %v3494_v11 = vunpack.i.l.bf16 %v3493_v0  ;;  %vm1468_vm13 = vcmask 908288  }
  0xd8   : > { %v1249_v60 = vsel %vm5438_vm3, %v3480_v13, %v3479_v31  ;;  %v4675_v45 = vpack.c.bf16 %v1218_v34, %v1217_v14  ;;  %v3490_v21 = vunpack.i.h.bf16 %v3488_v48  ;;  %v3489_v25 = vunpack.i.l.bf16 %v3488_v48  ;;  %2565 = vperm.xlu1 %3607, %v2539_v38   ;;  %vm4704_vm11 = vmpackc.low %vm4677_vm2, %vm4677_vm2  ;;  %v2543_v14 = vld [vmem:[%s5308_s4 + $0x30] sm:$0xff] }
  0xd9   : > { %v4673_v2 = vpack.c.bf16 %v1250_v35, %v1249_v60  ;;  %2570 = vperm.xlu0 %3606, %v2540_v46   ;;  %v2542_v35 = vld [vmem:[%s5308_s4 + $0x28] sm:$0xff]  ;;  %vm4725_vm8 = vmpackc.low %vm4687_vm9, %vm4687_vm9  ;;  %vm5456_vm2 = vnez %v5404_v22  ;;  %vm1885_vm9 = vcmask 523264  }
  0xda   : > { %v908_v5 = vsel %vm906_vm12, %v3495_v57, %v3490_v21  ;;  %v932_v29 = vsel %vm906_vm12, %v3490_v21, %v3495_v57  ;;  %v907_v30 = vsel %vm906_vm12, %v3494_v11, %v3489_v25  ;;  %v931_v54 = vsel %vm906_vm12, %v3489_v25, %v3494_v11  ;;  %v3503_v23 = vpop.permute.xlu1 %3502  ;;  %vm4770_vm15 = vmand %vm1514_vm4, %vm4167_vm7  ;;  %v3638_v22 = vld [vmem:[%s5305_s1 + $0xc8] ss:$20 sps:$4 sm:$0xff]   ;;  %v3658_v57 = vld [vmem:[%s5305_s1 + $0xf8] ss:$20 sps:$4 sm:$0xff]  }
  0xdb   : > { %3105 = vmatprep.subr.msk.bf16.mxu0 %vm4549_vm5, %v4673_v2  ;;  %v3014_v6 = vpack.c.bf16 %v908_v5, %v907_v30  ;;  %v3017_v12 = vpack.c.bf16 %v932_v29, %v931_v54  ;;  %v3498_v16 = vpop.permute.xlu0 %3497  ;;  %v3505_v13 = vunpack.i.h.bf16 %v3503_v23  ;;  %v3504_v31 = vunpack.i.l.bf16 %v3503_v23  ;;  %v2544_v29 = vld [vmem:[%s5308_s4 + $0x38] sm:$0xff]  ;;  %v2545_v30 = vld [vmem:[%s5308_s4 + $0x40] sm:$0xff] }
  0xdc   : > { %3108 = vmatpush1.bf16.msk.msra.mxu0 %vm4553_vm14, %v4675_v45  ;;  %v3500_v33 = vunpack.i.h.bf16 %v3498_v16  ;;  %v3499_v34 = vunpack.i.l.bf16 %v3498_v16  ;;  %2575 = vperm.xlu1 %3607, %v2541_v17   ;;  %vm5450_vm7 = vnez %v5377_v24  ;;  %v2551_v24 = vld [vmem:[%s5308_s4 + $0x70] sm:$0xff] }
  0xdd   : > { %v1341_v36 = vsel %vm1339_vm1, %v3504_v31, %v3505_v13  ;;  %v1373_v38 = vsel %vm1339_vm1, %v3505_v13, %v3504_v31  ;;  %3015 = vmatprep.subr.msk.bf16.mxu1 %vm4171_vm0, %v3014_v6  ;;  %2580 = vperm.xlu0 %3606, %v2542_v35   ;;  %vm1520_vm6 = vmand %vm4770_vm15, %vm5450_vm7 }
  0xde   : > { %v1340_v60 = vsel %vm1339_vm1, %v3499_v34, %v3500_v33  ;;  %v1372_v0 = vsel %vm1339_vm1, %v3500_v33, %v3499_v34  ;;  %3018 = vmatpush1.bf16.msk.msra.mxu1 %vm4704_vm11, %v3017_v12  ;;  %v3513_v48 = vpop.permute.xlu1 %3512 }
  0xdf   : > { %v4729_v11 = vpack.c.bf16 %v1373_v38, %v1372_v0  ;;  %v4731_v21 = vpack.c.bf16 %v1341_v36, %v1340_v60  ;;  %v3508_v25 = vpop.permute.xlu0 %3507  ;;  %v3515_v26 = vunpack.i.h.bf16 %v3513_v48  ;;  %v3514_v46 = vunpack.i.l.bf16 %v3513_v48  ;;  %v2546_v38 = vld [vmem:[%s5308_s4 + $0x48] sm:$0xff]  ;;  %v2547_v0 = vld [vmem:[%s5308_s4 + $0x50] sm:$0xff] }
  0xe0   : > { %v3510_v17 = vunpack.i.h.bf16 %v3508_v25  ;;  %v3509_v5 = vunpack.i.l.bf16 %v3508_v25  ;;  %2585 = vperm.xlu1 %3607, %v2543_v14  }
  0xe1   : > { %3111 = vmatprep.subr.msk.bf16.mxu0 %vm4725_vm8, %v4729_v11  ;;  %2590 = vperm.xlu0 %3606, %v2544_v29  }
  0xe2   : > { %v910_v54 = vsel %vm906_vm12, %v3515_v26, %v3510_v17  ;;  %v934_v23 = vsel %vm906_vm12, %v3510_v17, %v3515_v26  ;;  %v909_v6 = vsel %vm906_vm12, %v3514_v46, %v3509_v5  ;;  %v933_v12 = vsel %vm906_vm12, %v3509_v5, %v3514_v46  ;;  %3114 = vmatpush1.bf16.msk.msra.mxu0 %vm5447_vm10, %v4731_v21  ;;  %v3523_v16 = vpop.permute.xlu1 %3522 }
  0xe3   : > { %v3020_v13 = vpack.c.bf16 %v910_v54, %v909_v6  ;;  %v3023_v31 = vpack.c.bf16 %v934_v23, %v933_v12  ;;  %v3518_v19 = vpop.permute.xlu0 %3517  ;;  %v3525_v33 = vunpack.i.h.bf16 %v3523_v16  ;;  %v3524_v34 = vunpack.i.l.bf16 %v3523_v16  ;;  %v2548_v6 = vld [vmem:[%s5308_s4 + $0x58] sm:$0xff]  ;;  %v2549_v12 = vld [vmem:[%s5308_s4 + $0x60] sm:$0xff] }
  0xe4   : > { %v3520_v35 = vunpack.i.h.bf16 %v3518_v19  ;;  %v3519_v36 = vunpack.i.l.bf16 %v3518_v19  ;;  %2595 = vperm.xlu1 %3607, %v2545_v30  }
  0xe5   : > { %v1343_v14 = vsel %vm1339_vm1, %v3524_v34, %v3525_v33  ;;  %v1375_v60 = vsel %vm1339_vm1, %v3525_v33, %v3524_v34  ;;  %3021 = vmatprep.subr.msk.bf16.mxu1 %vm4171_vm0, %v3020_v13  ;;  %2600 = vperm.xlu0 %3606, %v2546_v38  }
  0xe6   : > { %v1342_v48 = vsel %vm1339_vm1, %v3519_v36, %v3520_v35  ;;  %v1374_v25 = vsel %vm1339_vm1, %v3520_v35, %v3519_v36  ;;  %3024 = vmatpush1.bf16.msk.msra.mxu1 %vm4704_vm11, %v3023_v31  ;;  %v3533_v26 = vpop.permute.xlu1 %3532 }
  0xe7   : > { %v4764_v46 = vpack.c.bf16 %v1375_v60, %v1374_v25  ;;  %v4766_v17 = vpack.c.bf16 %v1343_v14, %v1342_v48  ;;  %v3528_v5 = vpop.permute.xlu0 %3527  ;;  %v3535_v29 = vunpack.i.h.bf16 %v3533_v26  ;;  %v3534_v30 = vunpack.i.l.bf16 %v3533_v26 }
  0xe8   : > { %v3530_v20 = vunpack.i.h.bf16 %v3528_v5  ;;  %v3529_v54 = vunpack.i.l.bf16 %v3528_v5  ;;  %2605 = vperm.xlu1 %3607, %v2547_v0   ;;  %v2550_v0 = vld [vmem:[%s5308_s4 + $0x68] sm:$0xff] }
  0xe9   : > { %3117 = vmatprep.subr.msk.bf16.mxu0 %vm4725_vm8, %v4764_v46  ;;  %2610 = vperm.xlu0 %3606, %v2548_v6  }
  0xea   : > { %v912_v16 = vsel %vm906_vm12, %v3535_v29, %v3530_v20  ;;  %v936_v43 = vsel %vm906_vm12, %v3530_v20, %v3535_v29  ;;  %v911_v13 = vsel %vm906_vm12, %v3534_v30, %v3529_v54  ;;  %v935_v31 = vsel %vm906_vm12, %v3529_v54, %v3534_v30  ;;  %3120 = vmatpush1.bf16.msk.msra.mxu0 %vm5447_vm10, %v4766_v17  ;;  %v3543_v19 = vpop.permute.xlu1 %3542 }
  0xeb   : > { %v3026_v33 = vpack.c.bf16 %v912_v16, %v911_v13  ;;  %v3029_v34 = vpack.c.bf16 %v936_v43, %v935_v31  ;;  %v3538_v35 = vpop.permute.xlu0 %3537  ;;  %v3545_v36 = vunpack.i.h.bf16 %v3543_v19  ;;  %v3544_v38 = vunpack.i.l.bf16 %v3543_v19  ;;  %v2552_v13 = vld [vmem:[%s5308_s4 + $0x78] sm:$0xff] }
  0xec   : > { %v3540_v14 = vunpack.i.h.bf16 %v3538_v35  ;;  %v3539_v60 = vunpack.i.l.bf16 %v3538_v35  ;;  %2615 = vperm.xlu1 %3607, %v2549_v12   ;;  %v1522_v30 = vsel %vm1520_vm6, 1, %v3688_v3 }
  0xed   : > { %v1345_v48 = vsel %vm1339_vm1, %v3544_v38, %v3545_v36  ;;  %v1377_v25 = vsel %vm1339_vm1, %v3545_v36, %v3544_v38  ;;  %3027 = vmatprep.subr.msk.bf16.mxu1 %vm4171_vm0, %v3026_v33  ;;  %2620 = vperm.xlu0 %3606, %v2550_v0   ;;  %v1530_v31 = vrot.slane %v1522_v30, %v3817_v28 }
  0xee   : > { %v1344_v26 = vsel %vm1339_vm1, %v3539_v60, %v3540_v14  ;;  %v1376_v5 = vsel %vm1339_vm1, %v3540_v14, %v3539_v60  ;;  %3030 = vmatpush1.bf16.msk.msra.mxu1 %vm4704_vm11, %v3029_v34  ;;  %v3553_v29 = vpop.permute.xlu1 %3552 }
  0xef   : > { %v4809_v20 = vpack.c.bf16 %v1377_v25, %v1376_v5  ;;  %v4811_v54 = vpack.c.bf16 %v1345_v48, %v1344_v26  ;;  %v3548_v23 = vpop.permute.xlu0 %3547  ;;  %v3555_v6 = vunpack.i.h.bf16 %v3553_v29  ;;  %v3554_v12 = vunpack.i.l.bf16 %v3553_v29  ;;  %v3608_v5 = vld [vmem:[%s5305_s1] ss:$20 sps:$4 sm:$0xff]  }
  0xf0   : > { %v3550_v16 = vunpack.i.h.bf16 %v3548_v23  ;;  %v3549_v43 = vunpack.i.l.bf16 %v3548_v23  ;;  %2625 = vperm.xlu1 %3607, %v2551_v24   ;;  %vm4838_vm3 = vcmp.eq.s32.totalorder %v1530_v31, 1 }
  0xf1   : > { %3123 = vmatprep.subr.msk.bf16.mxu0 %vm4725_vm8, %v4809_v20  ;;  %2630 = vperm.xlu0 %3606, %v2552_v13  }
  0xf2   : > { %v914_v19 = vsel %vm906_vm12, %v3555_v6, %v3550_v16  ;;  %v938_v33 = vsel %vm906_vm12, %v3550_v16, %v3555_v6  ;;  %v913_v34 = vsel %vm906_vm12, %v3554_v12, %v3549_v43  ;;  %v937_v35 = vsel %vm906_vm12, %v3549_v43, %v3554_v12  ;;  %3126 = vmatpush1.bf16.msk.msra.mxu0 %vm5447_vm10, %v4811_v54  ;;  %v3563_v36 = vpop.permute.xlu1 %3562  ;;  %vm4871_vm12 = vmpackc.low %vm4838_vm3, %vm4838_vm3 }
  0xf3   : > { %v3032_v38 = vpack.c.bf16 %v914_v19, %v913_v34  ;;  %v3035_v14 = vpack.c.bf16 %v938_v33, %v937_v35  ;;  %v3558_v60 = vpop.permute.xlu0 %3557  ;;  %v3565_v0 = vunpack.i.h.bf16 %v3563_v36  ;;  %v3564_v48 = vunpack.i.l.bf16 %v3563_v36  ;;  %v3611_v35 = vld [vmem:[%s5305_s1 + $0x8] ss:$20 sps:$4 sm:$0xff]  }
  0xf4   : > { %v3560_v28 = vunpack.i.h.bf16 %v3558_v60  ;;  %v3559_v25 = vunpack.i.l.bf16 %v3558_v60 }
  0xf5   : > { %v1347_v24 = vsel %vm1339_vm1, %v3564_v48, %v3565_v0  ;;  %v1379_v26 = vsel %vm1339_vm1, %v3565_v0, %v3564_v48  ;;  %3033 = vmatprep.subr.msk.bf16.mxu1 %vm4171_vm0, %v3032_v38  ;;  %vm5453_vm0 = vnez %v5344_v63  ;;  %v3631_v38 = vld [vmem:[%s5305_s1 + $0x80] ss:$20 sps:$4 sm:$0xff]  }
  0xf6   : > { %v1346_v29 = vsel %vm1339_vm1, %v3559_v25, %v3560_v28  ;;  %v1378_v30 = vsel %vm1339_vm1, %v3560_v28, %v3559_v25  ;;  %3036 = vmatpush1.bf16.msk.msra.mxu1 %vm4704_vm11, %v3035_v14  ;;  %v3573_v23 = vpop.permute.xlu1 %3572  ;;  %v3617_v25 = vld [vmem:[%s5305_s1 + $0x34] ss:$20 sps:$4 sm:$0xff]   ;;  %vm5457_vm1 = vnez %v5400_v15  ;;  %v3635_v15 = vld [vmem:[%s5305_s1 + $0x10] ss:$20 sps:$4 sm:$0xff]  }
  0xf7   : > { %v4842_v12 = vpack.c.bf16 %v1379_v26, %v1378_v30  ;;  %v4844_v52 = vpack.c.bf16 %v1347_v24, %v1346_v29  ;;  %v3568_v16 = vpop.permute.xlu0 %3567  ;;  %v3575_v43 = vunpack.i.h.bf16 %v3573_v23  ;;  %v3574_v13 = vunpack.i.l.bf16 %v3573_v23  ;;  %3157 = vmatprep.subr.msk.bf16.mxu1 %vm5453_vm0, %v3934_v59 }
  0xf8   : > { %v3570_v19 = vunpack.i.h.bf16 %v3568_v16  ;;  %v3569_v31 = vunpack.i.l.bf16 %v3568_v16 }
  0xf9   : > { %v1470_v33 = vsel %vm1468_vm13, %v3574_v13, %v3575_v43  ;;  %v1502_v34 = vsel %vm1468_vm13, %v3575_v43, %v3574_v13  ;;  %1943 = vmatmul.mubr.bf16.vlgmr.msra.gmra.mrb[0].mxu1 %v3608_v5  ;;  %3129 = vmatprep.subr.msk.bf16.mxu0 %vm4725_vm8, %v4842_v12 }
  0xfa   : > { %v1469_v59 = vsel %vm1468_vm13, %v3569_v31, %v3570_v19  ;;  %v1501_v36 = vsel %vm1468_vm13, %v3570_v19, %v3569_v31  ;;  %3173 = vmatpush1.bf16.msk.msra.mxu1 %vm5447_vm10, %v3939_v61  ;;  %3132 = vmatpush1.bf16.msk.msra.mxu0 %vm5447_vm10, %v4844_v52  ;;  %v3583_v14 = vpop.permute.xlu1 %3582  ;;  %v3620_v31 = vld [vmem:[%s5305_s1 + $0x54] ss:$20 sps:$4 sm:$0xff]  }
  0xfb   : > { %v3134_v60 = vpack.c.bf16 %v1502_v34, %v1501_v36  ;;  %v3137_v0 = vpack.c.bf16 %v1470_v33, %v1469_v59  ;;  %3158 = vmatprep.subr.msk.bf16.mxu1 %vm5453_vm0, %v3945_v62  ;;  %v3578_v48 = vpop.permute.xlu0 %3577  ;;  %v3585_v61 = vunpack.i.h.bf16 %v3583_v14  ;;  %v3584_v28 = vunpack.i.l.bf16 %v3583_v14  ;;  %1952 = vmatprep.mubr.bf16.mxu1 %v3614_v32  ;;  %v3616_v62 = vld [vmem:[%s5305_s1 + $0x28] ss:$20 sps:$4 sm:$0xff]   ;;  %v3619_v34 = vld [vmem:[%s5305_s1 + $0x30] ss:$20 sps:$4 sm:$0xff]  }
  0xfc   : > { %v3580_v24 = vunpack.i.h.bf16 %v3578_v48  ;;  %v3579_v26 = vunpack.i.l.bf16 %v3578_v48  ;;  %v3623_v14 = vld [vmem:[%s5305_s1 + $0x5c] ss:$20 sps:$4 sm:$0xff]  }
  0xfd   : > { %2056 = vmatmul.mubr.bf16.vlgmr.msra.gmra.mrb[0].mxu0 %v3611_v35  ;;  %3135 = vmatprep.subr.msk.bf16.mxu0 %vm4871_vm12, %v3134_v60  ;;  %v1472_v5 = vsel %vm1468_vm13, %v3584_v28, %v3585_v61  ;;  %v1504_v29 = vsel %vm1468_vm13, %v3585_v61, %v3584_v28 }
  0xfe   : > { %v1471_v30 = vsel %vm1468_vm13, %v3579_v26, %v3580_v24  ;;  %v1503_v23 = vsel %vm1468_vm13, %v3580_v24, %v3579_v26  ;;  %3174 = vmatpush1.bf16.msk.msra.mxu1 %vm5447_vm10, %v3967_v1  ;;  %3138 = vmatpush1.bf16.msk.msra.mxu0 %vm5456_vm2, %v3137_v0  ;;  %v3593_v6 = vpop.permute.xlu1 %3592 }
  0xff   : > { %v3140_v16 = vpack.c.bf16 %v1504_v29, %v1503_v23  ;;  %v3143_v43 = vpack.c.bf16 %v1472_v5, %v1471_v30  ;;  %3159 = vmatprep.subr.msk.bf16.mxu1 %vm5453_vm0, %v3976_v10  ;;  %2065 = vmatprep.mubr.bf16.mxu0 %v3617_v25  ;;  %v3588_v13 = vpop.permute.xlu0 %3587  ;;  %v3595_v32 = vunpack.i.h.bf16 %v3593_v6  ;;  %v3594_v19 = vunpack.i.l.bf16 %v3593_v6  ;;  %v3622_v25 = vld [vmem:[%s5305_s1 + $0x50] ss:$20 sps:$4 sm:$0xff]  }
 0x100   : > { %v3590_v33 = vunpack.i.h.bf16 %v3588_v13  ;;  %v3589_v1 = vunpack.i.l.bf16 %v3588_v13 }
 0x101   : > { %1953 = vmatmul.mubr.bf16.gmra.mrb[4].mxu1 %v3616_v62  ;;  %3141 = vmatprep.subr.msk.bf16.mxu0 %vm4871_vm12, %v3140_v16  ;;  %v1474_v10 = vsel %vm1468_vm13, %v3594_v19, %v3595_v32  ;;  %v1506_v35 = vsel %vm1468_vm13, %v3595_v32, %v3594_v19 }
 0x102   : > { %3175 = vmatpush1.bf16.msk.msra.mxu1 %vm5447_vm10, %v4005_v8  ;;  %3144 = vmatpush1.bf16.msk.msra.mxu0 %vm5456_vm2, %v3143_v43  ;;  %v1473_v59 = vsel %vm1468_vm13, %v3589_v1, %v3590_v33  ;;  %v1505_v36 = vsel %vm1468_vm13, %v3590_v33, %v3589_v1  ;;  %v3603_v60 = vpop.permute.xlu1 %3602 }
 0x103   : > { %3160 = vmatprep.subr.msk.bf16.mxu1 %vm5453_vm0, %v4014_v9  ;;  %v3146_v0 = vpack.c.bf16 %v1506_v35, %v1505_v36  ;;  %v3149_v48 = vpack.c.bf16 %v1474_v10, %v1473_v59  ;;  %1962 = vmatprep.mubr.bf16.mxu1 %v3620_v31  ;;  %v3605_v8 = vunpack.i.h.bf16 %v3603_v60  ;;  %v3604_v61 = vunpack.i.l.bf16 %v3603_v60  ;;  %v3598_v28 = vpop.permute.xlu0 %3597  ;;  %v3626_v9 = vld [vmem:[%s5305_s1 + $0x7c] ss:$20 sps:$4 sm:$0xff]  }
 0x104   : > { %v3600_v24 = vunpack.i.h.bf16 %v3598_v28  ;;  %v3599_v26 = vunpack.i.l.bf16 %v3598_v28 }
 0x105   : > { %2066 = vmatmul.mubr.bf16.gmra.mrb[4].mxu0 %v3619_v34  ;;  %3147 = vmatprep.subr.msk.bf16.mxu0 %vm4871_vm12, %v3146_v0  ;;  %v1476_v5 = vsel %vm1468_vm13, %v3604_v61, %v3605_v8  ;;  %v1508_v63 = vsel %vm1468_vm13, %v3605_v8, %v3604_v61 }
 0x106   : > { %3176 = vmatpush1.bf16.msk.msra.mxu1 %vm5447_vm10, %v4023_v18  ;;  %2075 = vmatprep.mubr.bf16.mxu0 %v3623_v14  ;;  %v1475_v29 = vsel %vm1468_vm13, %v3599_v26, %v3600_v24  ;;  %v1507_v62 = vsel %vm1468_vm13, %v3600_v24, %v3599_v26  ;;  %v3625_v18 = vld [vmem:[%s5305_s1 + $0x58] ss:$20 sps:$4 sm:$0xff]  }
 0x107   : > { %3161 = vmatprep.subr.msk.bf16.mxu1 %vm5457_vm1, %v4325_v44  ;;  %3150 = vmatpush1.bf16.msk.msra.mxu0 %vm5456_vm2, %v3149_v48  ;;  %v3152_v30 = vpack.c.bf16 %v1508_v63, %v1507_v62  ;;  %v3155_v23 = vpack.c.bf16 %v1476_v5, %v1475_v29  ;;  %v3629_v44 = vld [vmem:[%s5305_s1 + $0x84] ss:$20 sps:$4 sm:$0xff]  }
 0x109   : > { %1963 = vmatmul.mubr.bf16.gmra.mrb[8].mxu1 %v3622_v25  ;;  %3153 = vmatprep.subr.msk.bf16.mxu0 %vm4871_vm12, %v3152_v30 }
 0x10a   : > { %3177 = vmatpush1.bf16.msk.msra.mxu1 %vm5456_vm2, %v4334_v7  ;;  %1972 = vmatprep.mubr.bf16.mxu1 %v3626_v9  ;;  %v3628_v7 = vld [vmem:[%s5305_s1 + $0x78] ss:$20 sps:$4 sm:$0xff]  }
 0x10b   : > { %3162 = vmatprep.subr.msk.bf16.mxu1 %vm5457_vm1, %v4376_v42  ;;  %3156 = vmatpush1.bf16.msk.msra.mxu0 %vm5456_vm2, %v3155_v23  ;;  %v3632_v42 = vld [vmem:[%s5305_s1 + $0xa4] ss:$20 sps:$4 sm:$0xff]  }
 0x10d   : > { %2076 = vmatmul.mubr.bf16.gmra.mrb[8].mxu0 %v3625_v18 }
 0x10e   : > { %3178 = vmatpush1.bf16.msk.msra.mxu1 %vm5456_vm2, %v4378_v58  ;;  %2085 = vmatprep.mubr.bf16.mxu0 %v3629_v44  ;;  %v3634_v58 = vld [vmem:[%s5305_s1 + $0xa0] ss:$20 sps:$4 sm:$0xff]  }
 0x10f   : > { %3163 = vmatprep.subr.msk.bf16.mxu1 %vm5457_vm1, %v4431_v49  ;;  %v3636_v49 = vld [vmem:[%s5305_s1 + $0xcc] ss:$20 sps:$4 sm:$0xff]  }
 0x111   : > { %1973 = vmatmul.mubr.bf16.gmra.mrb[12].mxu1 %v3628_v7 }
 0x112   : > { %3179 = vmatpush1.bf16.msk.msra.mxu1 %vm5456_vm2, %v4433_v50  ;;  %1982 = vmatprep.mubr.bf16.mxu1 %v3632_v42  ;;  %v3640_v50 = vld [vmem:[%s5305_s1 + $0xf4] ss:$20 sps:$4 sm:$0xff]  }
 0x113   : > { %3164 = vmatprep.subr.msk.bf16.mxu1 %vm5457_vm1, %v4489_v41  ;;  %v3639_v41 = vld [vmem:[%s5305_s1 + $0x38] ss:$20 sps:$4 sm:$0xff]  }
 0x115   : > { %2086 = vmatmul.mubr.bf16.gmra.mrb[12].mxu0 %v3631_v38 }
 0x116   : > { %3180 = vmatpush1.bf16.msk.msra.mxu1 %vm5456_vm2, %v4491_v47  ;;  %2168 = vmatprep.mubr.bf16.mxu0 %v3688_v3  ;;  %v3642_v47 = vld [vmem:[%s5305_s1 + $0xf0] ss:$20 sps:$4 sm:$0xff]  }
 0x117   : > { %3165 = vmatprep.subr.msk.bf16.mxu1 %vm4549_vm5, %v4557_v40  ;;  %v3644_v40 = vld [vmem:[%s5305_s1 + $0x11c] ss:$20 sps:$4 sm:$0xff]  }
 0x119   : > { %1983 = vmatmul.mubr.bf16.gmra.mrb[16].mxu1 %v3634_v58 }
 0x11a   : > { %3181 = vmatpush1.bf16.msk.msra.mxu1 %vm4553_vm14, %v4559_v37  ;;  %1992 = vmatprep.mubr.bf16.mxu1 %v3636_v49  ;;  %v3650_v37 = vld [vmem:[%s5305_s1 + $0xac] ss:$20 sps:$4 sm:$0xff]  }
 0x11b   : > { %3166 = vmatprep.subr.msk.bf16.mxu1 %vm4549_vm5, %v4591_v53  ;;  %v3647_v53 = vld [vmem:[%s5305_s1 + $0x88] ss:$20 sps:$4 sm:$0xff]  }
 0x11d   : > { %2929 = vmatmul.mubr.msk.bf16.vlgmr.msra.gmra.mrb[0].mxu0 %vm1885_vm9, %v3635_v15 }
 0x11e   : > { %3182 = vmatpush1.bf16.msk.msra.mxu1 %vm4553_vm14, %v4593_v55  ;;  %2178 = vmatprep.mubr.bf16.mxu0 %v3688_v3  ;;  %v3648_v55 = vld [vmem:[%s5305_s1 + $0xa8] ss:$20 sps:$4 sm:$0xff]  }
 0x11f   : > { %3167 = vmatprep.subr.msk.bf16.mxu1 %vm4549_vm5, %v4625_v56  ;;  %v3652_v56 = vld [vmem:[%s5305_s1 + $0xd4] ss:$20 sps:$4 sm:$0xff]  }
 0x121   : > { %1993 = vmatmul.mubr.bf16.gmra.mrb[20].mxu1 %v3638_v22 }
 0x122   : > { %3183 = vmatpush1.bf16.msk.msra.mxu1 %vm4553_vm14, %v4627_v51  ;;  %2002 = vmatprep.mubr.bf16.mxu1 %v3640_v50  ;;  %v3651_v51 = vld [vmem:[%s5305_s1 + $0xb0] ss:$20 sps:$4 sm:$0xff]  }
 0x123   : > { %3168 = vmatprep.subr.msk.bf16.mxu1 %vm4549_vm5, %v4673_v2  ;;  %v3654_v2 = vld [vmem:[%s5305_s1 + $0xd0] ss:$20 sps:$4 sm:$0xff]  }
 0x125   : > { %2930 = vmatmul.mubr.msk.bf16.gmra.mrb[4].mxu0 %vm1885_vm9, %v3639_v41 }
 0x126   : > { %3184 = vmatpush1.bf16.msk.msra.mxu1 %vm4553_vm14, %v4675_v45  ;;  %2188 = vmatprep.mubr.bf16.mxu0 %v3688_v3  ;;  %v3655_v45 = vld [vmem:[%s5305_s1 + $0xd8] ss:$20 sps:$4 sm:$0xff]  }
 0x127   : > { %3169 = vmatprep.subr.msk.bf16.mxu1 %vm4725_vm8, %v4729_v11  ;;  %v3660_v11 = vld [vmem:[%s5305_s1 + $0x124] ss:$20 sps:$4 sm:$0xff]  }
 0x129   : > { %2003 = vmatmul.mubr.bf16.gmra.mrb[24].mxu1 %v3642_v47 }
 0x12a   : > { %3185 = vmatpush1.bf16.msk.msra.mxu1 %vm5447_vm10, %v4731_v21  ;;  %2012 = vmatprep.mubr.bf16.mxu1 %v3644_v40  ;;  %v3659_v21 = vld [vmem:[%s5305_s1 + $0x100] ss:$20 sps:$4 sm:$0xff]  }
 0x12b   : > { %3170 = vmatprep.subr.msk.bf16.mxu1 %vm4725_vm8, %v4764_v46  ;;  %v3662_v46 = vld [vmem:[%s5305_s1 + $0x120] ss:$20 sps:$4 sm:$0xff]  }
 0x12d   : > { %2931 = vmatmul.mubr.msk.bf16.gmra.mrb[8].mxu0 %vm1885_vm9, %v3643_v27 }
 0x12e   : > { %3186 = vmatpush1.bf16.msk.msra.mxu1 %vm5447_vm10, %v4766_v17  ;;  %2198 = vmatprep.mubr.bf16.mxu0 %v3688_v3  ;;  %v3663_v17 = vld [vmem:[%s5305_s1 + $0x128] ss:$20 sps:$4 sm:$0xff]  }
 0x12f   : > { %3171 = vmatprep.subr.msk.bf16.mxu1 %vm4725_vm8, %v4809_v20  ;;  %v5114_v20 = vpop.permute.xlu1 %2272 }
 0x131   : > { %2013 = vmatmul.mubr.bf16.gmra.mrb[28].mxu1 %v3646_v39 }
 0x132   : > { %3187 = vmatpush1.bf16.msk.msra.mxu1 %vm5447_vm10, %v4811_v54  ;;  %2095 = vmatprep.mubr.bf16.mxu1 %v3650_v37  ;;  %v2268_v54 = vpop.permute.xlu0 %2267 }
 0x133   : > { %3172 = vmatprep.subr.msk.bf16.mxu1 %vm4725_vm8, %v4842_v12  ;;  %v5116_v12 = vpop.permute.xlu1 %2277 }
 0x135   : > { %2932 = vmatmul.mubr.msk.bf16.gmra.mrb[12].mxu0 %vm1885_vm9, %v3647_v53 }
 0x136   : > { %3188 = vmatpush1.bf16.msk.msra.mxu1 %vm5447_vm10, %v4844_v52  ;;  %2208 = vmatprep.mubr.bf16.mxu0 %v3688_v3  ;;  %v5118_v52 = vpop.permute.xlu0 %2282 }
 0x137   : > { %v5120_v6 = vpop.permute.xlu1 %2287 }
 0x139   : > { %2096 = vmatmul.mubr.bf16.vlgmr.msra.gmra.mrb[16].mxu1 %v3648_v55 }
 0x13a   : > { %2105 = vmatprep.mubr.bf16.mxu1 %v3652_v56  ;;  %v5122_v16 = vpop.permute.xlu0 %2292 }
 0x13b   : > { %v5124_v43 = vpop.permute.xlu1 %2297 }
 0x13d   : > { %2933 = vmatmul.mubr.msk.bf16.gmra.mrb[16].mxu0 %vm1885_vm9, %v3651_v51 }
 0x13e   : > { %2218 = vmatprep.mubr.bf16.mxu0 %v3688_v3 }
 0x13f   : > { %v5128_v13 = vpop.permute.xlu1 %2307 }
 0x141   : > { %2106 = vmatmul.mubr.bf16.gmra.mrb[20].mxu1 %v3654_v2 }
 0x142   : > { %2115 = vmatprep.mubr.bf16.mxu1 %v3656_v4 }
 0x143   : > { %v5132_v19 = vpop.permute.xlu1 %2317 }
 0x145   : > { %2934 = vmatmul.mubr.msk.bf16.gmra.mrb[20].mxu0 %vm1885_vm9, %v3655_v45 }
 0x146   : > { %2228 = vmatprep.mubr.bf16.mxu0 %v3688_v3 }
 0x147   : > { %v5136_v33 = vpop.permute.xlu1 %2327 }
 0x149   : > { %2116 = vmatmul.mubr.bf16.gmra.mrb[24].mxu1 %v3658_v57 }
 0x14a   : > { %2125 = vmatprep.mubr.bf16.mxu1 %v3660_v11 }
 0x14b   : > { %v5140_v34 = vpop.permute.xlu1 %2337 }
 0x14d   : > { %2935 = vmatmul.mubr.msk.bf16.gmra.mrb[24].mxu0 %vm1885_vm9, %v3659_v21 }
 0x14e   : > { %2238 = vmatprep.mubr.bf16.mxu0 %v3688_v3  ;;  %v5126_v3 = vpop.permute.xlu0 %2302 }
 0x14f   : > { %v2396_v35 = vpop.permute.xlu1 %2395 }
 0x151   : > { %2126 = vmatmul.mubr.bf16.gmra.mrb[28].mxu1 %v3662_v46 }
 0x152   : > { %v5130_v32 = vpop.permute.xlu0 %2312 }
 0x153   : > { %v5144_v36 = vpop.permute.xlu1 %2405 }
 0x155   : > { %2936 = vmatmul.mubr.msk.bf16.gmra.mrb[28].mxu0 %vm1885_vm9, %v3663_v17 }
 0x156   : > { %v5134_v31 = vpop.permute.xlu0 %2322 }
 0x157   : > { %v5148_v61 = vpop.permute.xlu1 %2415 }
 0x15a   : > { %v5138_v1 = vpop.permute.xlu0 %2332 }
 0x15b   : > { %v5154_v63 = vpop.permute.xlu1 %2425 }
 0x15e   : > { %v5142_v10 = vpop.permute.xlu0 %2342 }
 0x15f   : > { %v5162_v30 = vpop.permute.xlu1 %2435 }
 0x162   : > { %v2401_v59 = vpop.permute.xlu0 %2400 }
 0x163   : > { %v5170_v7 = vpop.permute.xlu1 %2445 }
 0x166   : > { %v5146_v0 = vpop.permute.xlu0 %2410 }
 0x167   : > { %v5182_v22 = vpop.permute.xlu1 %2455 }
 0x16a   : > { %v5150_v28 = vpop.permute.xlu0 %2420 }
 0x16b   : > { %v5186_v41 = vpop.permute.xlu1 %2465 }
 0x16e   : > { %v5156_v9 = vpop.permute.xlu0 %2430 }
 0x16f   : > { %v2556_v11 = vpop.permute.xlu1 %2555 }
 0x172   : > { %v5168_v44 = vpop.permute.xlu0 %2440 }
 0x176   : > { %v5176_v58 = vpop.permute.xlu0 %2450 }
 0x17a   : > { %v5184_v50 = vpop.permute.xlu0 %2460 }
 0x17e   : > { %v5188_v39 = vpop.permute.xlu0 %2470 }
 0x1cc   : > { %v1944_v14 = vpop.f32.mrb[0].mxu1 }
 0x1cd   : > { %v1946_v60 = vpop.f32.mrb[1].mxu1 }
 0x1ce   : > { %v1948_v48 = vpop.f32.mrb[2].mxu1 }
 0x1cf   : > { %v1950_v8 = vpop.f32.mrb[3].mxu1 }
 0x1d4   : > { %v1954_v25 = vpop.f32.mrb[4].mxu1 }
 0x1d5   : > { %v1956_v24 = vpop.f32.mrb[5].mxu1 }
 0x1d6   : > { %v1958_v26 = vpop.f32.mrb[6].mxu1 }
 0x1d7   : > { %v5152_v5 = vpop.f32.mrb[7].mxu1 }
 0x1dc   : > { %v5158_v29 = vpop.f32.mrb[8].mxu1 }
 0x1dd   : > { %v5160_v62 = vpop.f32.mrb[9].mxu1 }
 0x1de   : > { %v5164_v23 = vpop.f32.mrb[10].mxu1 }
 0x1df   : > { %v5166_v18 = vpop.f32.mrb[11].mxu1 }
 0x1e4   : > { %v5172_v42 = vpop.f32.mrb[12].mxu1 }
 0x1e5   : > { %v5174_v38 = vpop.f32.mrb[13].mxu1 }
 0x1e6   : > { %v5178_v49 = vpop.f32.mrb[14].mxu1 }
 0x1e7   : > { %v5180_v15 = vpop.f32.mrb[15].mxu1 }
 0x1f0   : > { %v2170_v47 = vpop.f32.mrb[0].mxu0 }
 0x1f1   : > { %v3189_v40 = vadd.f32 %v2170_v47, %v1944_v14  ;;  %v2172_v27 = vpop.f32.mrb[1].mxu0 }
 0x1f2   : > { %v3190_v37 = vadd.f32 %v2172_v27, %v1946_v60  ;;  %v2174_v53 = vpop.f32.mrb[2].mxu0  ;;  %v2561_v60 = vpop.permute.xlu0 %2560 }
 0x1f3   : > { %v2345_v55 = vmul.f32 %v3189_v40, %v2268_v54  ;;  %v3191_v56 = vadd.f32 %v2174_v53, %v1948_v48  ;;  %v2176_v51 = vpop.f32.mrb[3].mxu0 }
 0x1f4   : > { %v2346_v2 = vmul.f32 %v3190_v37, %v2268_v54  ;;  %v3192_v4 = vadd.f32 %v2176_v51, %v1950_v8 }
 0x1f5   : > { %v2473_v45 = vadd.f32 %v2396_v35, %v2345_v55  ;;  %v2347_v57 = vmul.f32 %v3191_v56, %v5114_v20 }
 0x1f6   : > { %v2474_v21 = vadd.f32 %v2396_v35, %v2346_v2  ;;  %v2348_v46 = vmul.f32 %v3192_v4, %v5114_v20 }
 0x1f7   : > { %vm2505_vm5 = vcmp.ge.f32.partialorder %v2473_v45, 0.0  ;;  %v2633_v17 = vmul.f32 %v2556_v11, %v2473_v45  ;;  %v2475_v14 = vadd.f32 %v2401_v59, %v2347_v57 }
 0x1f8   : > { %vm2506_vm14 = vcmp.ge.f32.partialorder %v2474_v21, 0.0  ;;  %v2634_v54 = vmul.f32 %v2556_v11, %v2474_v21  ;;  %v2476_v48 = vadd.f32 %v2401_v59, %v2348_v46  ;;  %v2180_v8 = vpop.f32.mrb[4].mxu0 }
 0x1f9   : > { %v2665_v47 = vsel %vm2505_vm5, %v2473_v45, %v2633_v17  ;;  %vm2507_vm11 = vcmp.ge.f32.partialorder %v2475_v14, 0.0  ;;  %v2635_v35 = vmul.f32 %v2561_v60, %v2475_v14  ;;  %v3193_v20 = vadd.f32 %v2180_v8, %v1954_v25  ;;  %v2182_v40 = vpop.f32.mrb[5].mxu0 }
 0x1fa   : > { %2697 = vst [vmem:[%s5196_s14] sm:$0xff] %v2665_v47  ;;  %v2666_v27 = vsel %vm2506_vm14, %v2474_v21, %v2634_v54  ;;  %vm2508_vm8 = vcmp.ge.f32.partialorder %v2476_v48, 0.0  ;;  %v2636_v37 = vmul.f32 %v2561_v60, %v2476_v48  ;;  %v3194_v53 = vadd.f32 %v2182_v40, %v1956_v24  ;;  %v2184_v55 = vpop.f32.mrb[6].mxu0  ;;  %v2566_v21 = vpop.permute.xlu1 %2565 }
 0x1fb   : > { %2698 = vst [vmem:[%s5196_s14 + $0x8] sm:$0xff] %v2666_v27  ;;  %v2667_v56 = vsel %vm2507_vm11, %v2475_v14, %v2635_v35  ;;  %v2349_v51 = vmul.f32 %v3193_v20, %v5116_v12  ;;  %v3195_v2 = vadd.f32 %v2184_v55, %v1958_v26  ;;  %v2186_v59 = vpop.f32.mrb[7].mxu0  ;;  %v2571_v14 = vpop.permute.xlu0 %2570 }
 0x1fc   : > { %2699 = vst [vmem:[%s5196_s14 + $0x10] sm:$0xff] %v2667_v56  ;;  %v2668_v4 = vsel %vm2508_vm8, %v2476_v48, %v2636_v37  ;;  %v2350_v45 = vmul.f32 %v3194_v53, %v5116_v12  ;;  %v3196_v25 = vadd.f32 %v2186_v59, %v5152_v5 }
 0x1fd   : > { %2700 = vst [vmem:[%s5196_s14 + $0x18] sm:$0xff] %v2668_v4  ;;  %v2477_v57 = vadd.f32 %v5144_v36, %v2349_v51  ;;  %v2351_v11 = vmul.f32 %v3195_v2, %v5118_v52 }
 0x1fe   : > { %v2478_v24 = vadd.f32 %v5144_v36, %v2350_v45  ;;  %v2352_v46 = vmul.f32 %v3196_v25, %v5118_v52 }
 0x1ff   : > { %vm2509_vm10 = vcmp.ge.f32.partialorder %v2477_v57, 0.0  ;;  %v2637_v26 = vmul.f32 %v2566_v21, %v2477_v57  ;;  %v2479_v17 = vadd.f32 %v5146_v0, %v2351_v11  ;;  %v2581_v45 = vpop.permute.xlu0 %2580 }
 0x200   : > { %vm2510_vm4 = vcmp.ge.f32.partialorder %v2478_v24, 0.0  ;;  %v2638_v12 = vmul.f32 %v2566_v21, %v2478_v24  ;;  %v2480_v5 = vadd.f32 %v5146_v0, %v2352_v46  ;;  %v2190_v60 = vpop.f32.mrb[8].mxu0 }
 0x201   : > { %v2669_v54 = vsel %vm2509_vm10, %v2477_v57, %v2637_v26  ;;  %vm2511_vm15 = vcmp.ge.f32.partialorder %v2479_v17, 0.0  ;;  %v2639_v48 = vmul.f32 %v2571_v14, %v2479_v17  ;;  %v3197_v8 = vadd.f32 %v2190_v60, %v5158_v29  ;;  %v2192_v36 = vpop.f32.mrb[9].mxu0 }
 0x202   : > { %2701 = vst [vmem:[%s5196_s14 + $0x20] sm:$0xff] %v2669_v54  ;;  %v2670_v52 = vsel %vm2510_vm4, %v2478_v24, %v2638_v12  ;;  %vm2512_vm7 = vcmp.ge.f32.partialorder %v2480_v5, 0.0  ;;  %v2640_v47 = vmul.f32 %v2571_v14, %v2480_v5  ;;  %v3198_v35 = vadd.f32 %v2192_v36, %v5160_v62  ;;  %v2194_v20 = vpop.f32.mrb[10].mxu0  ;;  %v2576_v62 = vpop.permute.xlu1 %2575 }
 0x203   : > { %2702 = vst [vmem:[%s5196_s14 + $0x28] sm:$0xff] %v2670_v52  ;;  %v2671_v40 = vsel %vm2511_vm15, %v2479_v17, %v2639_v48  ;;  %v2353_v0 = vmul.f32 %v3197_v8, %v5120_v6  ;;  %v3199_v27 = vadd.f32 %v2194_v20, %v5164_v23  ;;  %v2196_v37 = vpop.f32.mrb[11].mxu0 }
 0x204   : > { %2703 = vst [vmem:[%s5196_s14 + $0x30] sm:$0xff] %v2671_v40  ;;  %v2672_v53 = vsel %vm2512_vm7, %v2480_v5, %v2640_v47  ;;  %v2354_v29 = vmul.f32 %v3198_v35, %v5120_v6  ;;  %v3200_v55 = vadd.f32 %v2196_v37, %v5166_v18 }
 0x205   : > { %2704 = vst [vmem:[%s5196_s14 + $0x38] sm:$0xff] %v2672_v53  ;;  %v2481_v56 = vadd.f32 %v5148_v61, %v2353_v0  ;;  %v2355_v51 = vmul.f32 %v3199_v27, %v5122_v16 }
 0x206   : > { %v2482_v2 = vadd.f32 %v5148_v61, %v2354_v29  ;;  %v2356_v59 = vmul.f32 %v3200_v55, %v5122_v16  ;;  %v2586_v36 = vpop.permute.xlu1 %2585 }
 0x207   : > { %vm2513_vm6 = vcmp.ge.f32.partialorder %v2481_v56, 0.0  ;;  %v2641_v23 = vmul.f32 %v2576_v62, %v2481_v56  ;;  %v2483_v4 = vadd.f32 %v5150_v28, %v2355_v51 }
 0x208   : > { %vm2514_vm13 = vcmp.ge.f32.partialorder %v2482_v2, 0.0  ;;  %v2642_v6 = vmul.f32 %v2576_v62, %v2482_v2  ;;  %v2484_v18 = vadd.f32 %v5150_v28, %v2356_v59  ;;  %v2200_v25 = vpop.f32.mrb[12].mxu0 }
 0x209   : > { %v2673_v57 = vsel %vm2513_vm6, %v2481_v56, %v2641_v23  ;;  %vm2515_vm3 = vcmp.ge.f32.partialorder %v2483_v4, 0.0  ;;  %v2643_v11 = vmul.f32 %v2581_v45, %v2483_v4  ;;  %v3201_v21 = vadd.f32 %v2200_v25, %v5172_v42  ;;  %v2202_v61 = vpop.f32.mrb[13].mxu0 }
 0x20a   : > { %2705 = vst [vmem:[%s5196_s14 + $0x40] sm:$0xff] %v2673_v57  ;;  %v2674_v16 = vsel %vm2514_vm13, %v2482_v2, %v2642_v6  ;;  %vm2516_vm0 = vcmp.ge.f32.partialorder %v2484_v18, 0.0  ;;  %v2644_v24 = vmul.f32 %v2581_v45, %v2484_v18  ;;  %v3202_v46 = vadd.f32 %v2202_v61, %v5174_v38  ;;  %v2204_v26 = vpop.f32.mrb[14].mxu0 }
 0x20b   : > { %2706 = vst [vmem:[%s5196_s14 + $0x48] sm:$0xff] %v2674_v16  ;;  %v2675_v17 = vsel %vm2515_vm3, %v2483_v4, %v2643_v11  ;;  %v2357_v28 = vmul.f32 %v3201_v21, %v5124_v43  ;;  %v3203_v14 = vadd.f32 %v2204_v26, %v5178_v49  ;;  %v2206_v12 = vpop.f32.mrb[15].mxu0  ;;  %v2596_v11 = vpop.permute.xlu1 %2595 }
 0x20c   : > { %2707 = vst [vmem:[%s5196_s14 + $0x50] sm:$0xff] %v2675_v17  ;;  %v2676_v5 = vsel %vm2516_vm0, %v2484_v18, %v2644_v24  ;;  %v2358_v42 = vmul.f32 %v3202_v46, %v5124_v43  ;;  %v3204_v60 = vadd.f32 %v2206_v12, %v5180_v15  ;;  %v2097_v54 = vpop.f32.mrb[16].mxu1  ;;  %v2591_v15 = vpop.permute.xlu0 %2590 }
 0x20d   : > { %2708 = vst [vmem:[%s5196_s14 + $0x58] sm:$0xff] %v2676_v5  ;;  %v2485_v48 = vadd.f32 %v5154_v63, %v2357_v28  ;;  %v2359_v38 = vmul.f32 %v3203_v14, %v5126_v3  ;;  %v2099_v8 = vpop.f32.mrb[17].mxu1 }
 0x20e   : > { %v2486_v52 = vadd.f32 %v5154_v63, %v2358_v42  ;;  %v2360_v47 = vmul.f32 %v3204_v60, %v5126_v3  ;;  %v2101_v49 = vpop.f32.mrb[18].mxu1 }
 0x20f   : > { %vm2517_vm12 = vcmp.ge.f32.partialorder %v2485_v48, 0.0  ;;  %v2645_v35 = vmul.f32 %v2586_v36, %v2485_v48  ;;  %v2487_v43 = vadd.f32 %v5156_v9, %v2359_v38  ;;  %v2103_v20 = vpop.f32.mrb[19].mxu1 }
 0x210   : > { %vm2518_vm2 = vcmp.ge.f32.partialorder %v2486_v52, 0.0  ;;  %v2646_v40 = vmul.f32 %v2586_v36, %v2486_v52  ;;  %v2488_v0 = vadd.f32 %v5156_v9, %v2360_v47  ;;  %v2210_v27 = vpop.f32.mrb[16].mxu0  ;;  %v2601_v26 = vpop.permute.xlu0 %2600 }
 0x211   : > { %v2677_v37 = vsel %vm2517_vm12, %v2485_v48, %v2645_v35  ;;  %vm2519_vm1 = vcmp.ge.f32.partialorder %v2487_v43, 0.0  ;;  %v2647_v63 = vmul.f32 %v2591_v15, %v2487_v43  ;;  %v3205_v53 = vadd.f32 %v2210_v27, %v2097_v54  ;;  %v2212_v3 = vpop.f32.mrb[17].mxu0 }
 0x212   : > { %2709 = vst [vmem:[%s5196_s14 + $0x60] sm:$0xff] %v2677_v37  ;;  %v2678_v29 = vsel %vm2518_vm2, %v2486_v52, %v2646_v40  ;;  %vm2520_vm9 = vcmp.ge.f32.partialorder %v2488_v0, 0.0  ;;  %v2648_v55 = vmul.f32 %v2591_v15, %v2488_v0  ;;  %v3206_v56 = vadd.f32 %v2212_v3, %v2099_v8  ;;  %v2214_v51 = vpop.f32.mrb[18].mxu0  ;;  %v2606_v40 = vpop.permute.xlu1 %2605 }
 0x213   : > { %2710 = vst [vmem:[%s5196_s14 + $0x68] sm:$0xff] %v2678_v29  ;;  %v2679_v62 = vsel %vm2519_vm1, %v2487_v43, %v2647_v63  ;;  %v2361_v2 = vmul.f32 %v3205_v53, %v5128_v13  ;;  %v3207_v59 = vadd.f32 %v2214_v51, %v2101_v49  ;;  %v2216_v9 = vpop.f32.mrb[19].mxu0 }
 0x214   : > { %2711 = vst [vmem:[%s5196_s14 + $0x70] sm:$0xff] %v2679_v62  ;;  %v2680_v23 = vsel %vm2520_vm9, %v2488_v0, %v2648_v55  ;;  %v2362_v4 = vmul.f32 %v3206_v56, %v5128_v13  ;;  %v3208_v45 = vadd.f32 %v2216_v9, %v2103_v20  ;;  %v2107_v6 = vpop.f32.mrb[20].mxu1  ;;  %v2611_v3 = vpop.permute.xlu0 %2610 }
 0x215   : > { %2712 = vst [vmem:[%s5196_s14 + $0x78] sm:$0xff] %v2680_v23  ;;  %v2489_v18 = vadd.f32 %v5162_v30, %v2361_v2  ;;  %v2363_v25 = vmul.f32 %v3207_v59, %v5130_v32  ;;  %v2109_v57 = vpop.f32.mrb[21].mxu1 }
 0x216   : > { %v2490_v21 = vadd.f32 %v5162_v30, %v2362_v4  ;;  %v2364_v61 = vmul.f32 %v3208_v45, %v5130_v32  ;;  %v2111_v16 = vpop.f32.mrb[22].mxu1 }
 0x217   : > { %vm2521_vm5 = vcmp.ge.f32.partialorder %v2489_v18, 0.0  ;;  %v2649_v24 = vmul.f32 %v2596_v11, %v2489_v18  ;;  %v2491_v46 = vadd.f32 %v5168_v44, %v2363_v25  ;;  %v2113_v13 = vpop.f32.mrb[23].mxu1 }
 0x218   : > { %vm2522_vm14 = vcmp.ge.f32.partialorder %v2490_v21, 0.0  ;;  %v2650_v17 = vmul.f32 %v2596_v11, %v2490_v21  ;;  %v2492_v28 = vadd.f32 %v5168_v44, %v2364_v61  ;;  %v2220_v14 = vpop.f32.mrb[20].mxu0 }
 0x219   : > { %v2681_v12 = vsel %vm2521_vm5, %v2489_v18, %v2649_v24  ;;  %vm2523_vm11 = vcmp.ge.f32.partialorder %v2491_v46, 0.0  ;;  %v2651_v30 = vmul.f32 %v2601_v26, %v2491_v46  ;;  %v3209_v5 = vadd.f32 %v2220_v14, %v2107_v6  ;;  %v2222_v32 = vpop.f32.mrb[21].mxu0  ;;  %v2616_v24 = vpop.permute.xlu1 %2615 }
 0x21a   : > { %2713 = vst [vmem:[%s5196_s14 + $0x80] sm:$0xff] %v2681_v12  ;;  %v2682_v42 = vsel %vm2522_vm14, %v2490_v21, %v2650_v17  ;;  %vm2524_vm8 = vcmp.ge.f32.partialorder %v2492_v28, 0.0  ;;  %v2652_v60 = vmul.f32 %v2601_v26, %v2492_v28  ;;  %v3210_v54 = vadd.f32 %v2222_v32, %v2109_v57  ;;  %v2224_v48 = vpop.f32.mrb[22].mxu0  ;;  %v2621_v14 = vpop.permute.xlu0 %2620 }
 0x21b   : > { %2714 = vst [vmem:[%s5196_s14 + $0x88] sm:$0xff] %v2682_v42  ;;  %v2683_v38 = vsel %vm2523_vm11, %v2491_v46, %v2651_v30  ;;  %v2365_v8 = vmul.f32 %v3209_v5, %v5132_v19  ;;  %v3211_v36 = vadd.f32 %v2224_v48, %v2111_v16  ;;  %v2226_v44 = vpop.f32.mrb[23].mxu0 }
 0x21c   : > { %2715 = vst [vmem:[%s5196_s14 + $0x90] sm:$0xff] %v2683_v38  ;;  %v2684_v52 = vsel %vm2524_vm8, %v2492_v28, %v2652_v60  ;;  %v2366_v47 = vmul.f32 %v3210_v54, %v5132_v19  ;;  %v3212_v49 = vadd.f32 %v2226_v44, %v2113_v13  ;;  %v2117_v35 = vpop.f32.mrb[24].mxu1 }
 0x21d   : > { %2716 = vst [vmem:[%s5196_s14 + $0x98] sm:$0xff] %v2684_v52  ;;  %v2493_v43 = vadd.f32 %v5170_v7, %v2365_v8  ;;  %v2367_v20 = vmul.f32 %v3211_v36, %v5134_v31  ;;  %v2119_v15 = vpop.f32.mrb[25].mxu1 }
 0x21e   : > { %v2494_v0 = vadd.f32 %v5170_v7, %v2366_v47  ;;  %v2368_v27 = vmul.f32 %v3212_v49, %v5134_v31  ;;  %v2121_v37 = vpop.f32.mrb[26].mxu1 }
 0x21f   : > { %vm2525_vm10 = vcmp.ge.f32.partialorder %v2493_v43, 0.0  ;;  %v2653_v63 = vmul.f32 %v2606_v40, %v2493_v43  ;;  %v2495_v53 = vadd.f32 %v5176_v58, %v2367_v20  ;;  %v2123_v19 = vpop.f32.mrb[27].mxu1  ;;  %v2626_v20 = vpop.permute.xlu1 %2625 }
 0x220   : > { %vm2526_vm4 = vcmp.ge.f32.partialorder %v2494_v0, 0.0  ;;  %v2654_v29 = vmul.f32 %v2606_v40, %v2494_v0  ;;  %v2496_v55 = vadd.f32 %v5176_v58, %v2368_v27  ;;  %v2230_v56 = vpop.f32.mrb[24].mxu0 }
 0x221   : > { %v2685_v51 = vsel %vm2525_vm10, %v2493_v43, %v2653_v63  ;;  %vm2527_vm15 = vcmp.ge.f32.partialorder %v2495_v53, 0.0  ;;  %v2655_v7 = vmul.f32 %v2611_v3, %v2495_v53  ;;  %v3213_v62 = vadd.f32 %v2230_v56, %v2117_v35  ;;  %v2232_v31 = vpop.f32.mrb[25].mxu0 }
 0x222   : > { %2717 = vst [vmem:[%s5196_s14 + $0xa0] sm:$0xff] %v2685_v51  ;;  %v2686_v2 = vsel %vm2526_vm4, %v2494_v0, %v2654_v29  ;;  %vm2528_vm7 = vcmp.ge.f32.partialorder %v2496_v55, 0.0  ;;  %v2656_v59 = vmul.f32 %v2611_v3, %v2496_v55  ;;  %v3214_v9 = vadd.f32 %v2232_v31, %v2119_v15  ;;  %v2234_v23 = vpop.f32.mrb[26].mxu0 }
 0x223   : > { %2718 = vst [vmem:[%s5196_s14 + $0xa8] sm:$0xff] %v2686_v2  ;;  %v2687_v4 = vsel %vm2527_vm15, %v2495_v53, %v2655_v7  ;;  %v2369_v45 = vmul.f32 %v3213_v62, %v5136_v33  ;;  %v3215_v6 = vadd.f32 %v2234_v23, %v2121_v37  ;;  %v2236_v58 = vpop.f32.mrb[27].mxu0 }
 0x224   : > { %2719 = vst [vmem:[%s5196_s14 + $0xb0] sm:$0xff] %v2687_v4  ;;  %v2688_v18 = vsel %vm2528_vm7, %v2496_v55, %v2656_v59  ;;  %v2370_v25 = vmul.f32 %v3214_v9, %v5136_v33  ;;  %v3216_v57 = vadd.f32 %v2236_v58, %v2123_v19  ;;  %v2127_v11 = vpop.f32.mrb[28].mxu1 }
 0x225   : > { %2720 = vst [vmem:[%s5196_s14 + $0xb8] sm:$0xff] %v2688_v18  ;;  %v2497_v21 = vadd.f32 %v5182_v22, %v2369_v45  ;;  %v2371_v61 = vmul.f32 %v3215_v6, %v5138_v1  ;;  %v2129_v16 = vpop.f32.mrb[29].mxu1 }
 0x226   : > { %v2498_v46 = vadd.f32 %v5182_v22, %v2370_v25  ;;  %v2372_v13 = vmul.f32 %v3216_v57, %v5138_v1  ;;  %v2131_v26 = vpop.f32.mrb[30].mxu1 }
 0x227   : > { %vm2529_vm6 = vcmp.ge.f32.partialorder %v2497_v21, 0.0  ;;  %v2657_v17 = vmul.f32 %v2616_v24, %v2497_v21  ;;  %v2499_v28 = vadd.f32 %v5184_v50, %v2371_v61  ;;  %v2133_v33 = vpop.f32.mrb[31].mxu1 }
 0x228   : > { %vm2530_vm13 = vcmp.ge.f32.partialorder %v2498_v46, 0.0  ;;  %v2658_v12 = vmul.f32 %v2616_v24, %v2498_v46  ;;  %v2500_v30 = vadd.f32 %v5184_v50, %v2372_v13  ;;  %v2240_v5 = vpop.f32.mrb[28].mxu0 }
 0x229   : > { %v2689_v32 = vsel %vm2529_vm6, %v2497_v21, %v2657_v17  ;;  %vm2531_vm3 = vcmp.ge.f32.partialorder %v2499_v28, 0.0  ;;  %v2659_v22 = vmul.f32 %v2621_v14, %v2499_v28  ;;  %v3217_v42 = vadd.f32 %v2240_v5, %v2127_v11  ;;  %v2242_v1 = vpop.f32.mrb[29].mxu0 }
 0x22a   : > { %2721 = vst [vmem:[%s5196_s14 + $0xc0] sm:$0xff] %v2689_v32  ;;  %v2690_v60 = vsel %vm2530_vm13, %v2498_v46, %v2658_v12  ;;  %vm2532_vm0 = vcmp.ge.f32.partialorder %v2500_v30, 0.0  ;;  %v2660_v54 = vmul.f32 %v2621_v14, %v2500_v30  ;;  %v3218_v48 = vadd.f32 %v2242_v1, %v2129_v16  ;;  %v2244_v38 = vpop.f32.mrb[30].mxu0 }
 0x22b   : > { %2722 = vst [vmem:[%s5196_s14 + $0xc8] sm:$0xff] %v2690_v60  ;;  %v2691_v8 = vsel %vm2531_vm3, %v2499_v28, %v2659_v22  ;;  %v2373_v36 = vmul.f32 %v3217_v42, %v5140_v34  ;;  %v3219_v44 = vadd.f32 %v2244_v38, %v2131_v26  ;;  %v2246_v50 = vpop.f32.mrb[31].mxu0 }
 0x22c   : > { %2723 = vst [vmem:[%s5196_s14 + $0xd0] sm:$0xff] %v2691_v8  ;;  %v2692_v52 = vsel %vm2532_vm0, %v2500_v30, %v2660_v54  ;;  %v2374_v47 = vmul.f32 %v3218_v48, %v5140_v34  ;;  %v3220_v49 = vadd.f32 %v2246_v50, %v2133_v33  ;;  %v2631_v34 = vpop.permute.xlu0 %2630 }
 0x22d   : > { %2724 = vst [vmem:[%s5196_s14 + $0xd8] sm:$0xff] %v2692_v52  ;;  %v2501_v35 = vadd.f32 %v5186_v41, %v2373_v36  ;;  %v2375_v43 = vmul.f32 %v3219_v44, %v5142_v10 }
 0x22e   : > { %v2502_v15 = vadd.f32 %v5186_v41, %v2374_v47  ;;  %v2376_v40 = vmul.f32 %v3220_v49, %v5142_v10 }
 0x22f   : > { %vm2533_vm12 = vcmp.ge.f32.partialorder %v2501_v35, 0.0  ;;  %v2661_v0 = vmul.f32 %v2626_v20, %v2501_v35  ;;  %v2503_v27 = vadd.f32 %v5188_v39, %v2375_v43 }
 0x230   : > { %vm2534_vm2 = vcmp.ge.f32.partialorder %v2502_v15, 0.0  ;;  %v2662_v37 = vmul.f32 %v2626_v20, %v2502_v15  ;;  %v2504_v63 = vadd.f32 %v5188_v39, %v2376_v40 }
 0x231   : > { %v2693_v53 = vsel %vm2533_vm12, %v2501_v35, %v2661_v0  ;;  %vm2535_vm1 = vcmp.ge.f32.partialorder %v2503_v27, 0.0  ;;  %v2663_v19 = vmul.f32 %v2631_v34, %v2503_v27 }
 0x232   : > { %2725 = vst [vmem:[%s5196_s14 + $0xe0] sm:$0xff] %v2693_v53  ;;  %v2694_v3 = vsel %vm2534_vm2, %v2502_v15, %v2662_v37  ;;  %vm2536_vm9 = vcmp.ge.f32.partialorder %v2504_v63, 0.0  ;;  %v2664_v41 = vmul.f32 %v2631_v34, %v2504_v63 }
 0x233   : > { %2726 = vst [vmem:[%s5196_s14 + $0xe8] sm:$0xff] %v2694_v3  ;;  %v2695_v10 = vsel %vm2535_vm1, %v2503_v27, %v2663_v19 }
 0x234   : > { %2727 = vst [vmem:[%s5196_s14 + $0xf0] sm:$0xff] %v2695_v10  ;;  %v2696_v29 = vsel %vm2536_vm9, %v2504_v63, %v2664_v41 }
 0x235   : > { %2728 = vst [vmem:[%s5196_s14 + $0xf8] sm:$0xff] %v2696_v29 }
 0x236 PF: > { %s16_s23 = sadd.s32 1, %s3686_s23   ;;  %s5458_s21 = smov %s3682_s22 }
 0x237   : > { %p13_p5 = scmp.ge.s32.totalorder %s16_s23, 4   ;;  %s5459_s22 = smov %s5461_s24 }
 0x239   :  { %15 = sbr.rel (!%p13_p5) target bundleno = 2 (0x2), region = 86 }

</bundles_post_ra>
